<compile_context>
chip_gen: v5e
topology: v5e:2x2
jax: 0.10.0
libtpu: 0.0.40
codegen_flags: <defaults>
</compile_context>

<pallas_src>
import jax
import jax.numpy as jnp
from jax.experimental import pallas as pl
from jax.experimental.pallas import tpu as pltpu

BATCH = 8
BATCH_TILE = 8          # rows per grid step; BATCH must be a multiple of this
N_FEATURES = 16
VOCAB = 16
EMBED = 16
HIDDEN = 32
MAX_LEN = 8


def rnn_sender_kernel(x_ref, gumbel_ref,
                      w_agent_ref, b_agent_ref,
                      w_ih_ref, b_ih_ref, w_hh_ref, b_hh_ref,
                      w_out_ref, b_out_ref,
                      emb_ref, sos_ref,
                      seq_ref, logp_ref, ent_ref):
    x = x_ref[...]                                   # (B, F) f32
    B = x.shape[0]
    V = w_out_ref.shape[1]
    H = w_hh_ref.shape[0]

    # ---- one-time hoists (per invocation, off the per-step serial path) ----
    w_ih = w_ih_ref[...]
    w_hh = w_hh_ref[...]
    emb_w_ih = jnp.dot(emb_ref[...], w_ih, preferred_element_type=jnp.float32)   # (V, H)
    b_comb = jnp.broadcast_to(b_ih_ref[...] + b_hh_ref[...], (B, H))             # (B, H)
    sos_ih_b = jnp.broadcast_to(
        jnp.dot(sos_ref[...], w_ih, preferred_element_type=jnp.float32),
        (B, H)) + b_comb                                                          # (B, H)
    w_out = w_out_ref[...]
    b_out_b = jnp.broadcast_to(b_out_ref[...], (B, V))                            # (B, V)

    # agent(x): Linear(n_features -> hidden) producing the initial RNN hidden state.
    h = (jnp.dot(x, w_agent_ref[...], preferred_element_type=jnp.float32)
         + jnp.broadcast_to(b_agent_ref[...], (B, H)))                            # (B, H)

    lane_idx = jax.lax.broadcasted_iota(jnp.int32, (B, V), 1)
    col_idx = jax.lax.broadcasted_iota(jnp.int32, (B, MAX_LEN + 1), 1)

    # register accumulators; the last (EOS) column stays zero -> padding is free.
    seq_acc = jnp.zeros((B, MAX_LEN + 1), jnp.int32)
    logp_acc = jnp.zeros((B, MAX_LEN + 1), jnp.float32)
    ent_acc = jnp.zeros((B, MAX_LEN + 1), jnp.float32)

    onehot = jnp.zeros((B, V), jnp.float32)          # placeholder, unused at t == 0

    for t in range(MAX_LEN):  # static unroll; max_len is small
        # ---- fused RNNCell: embedding(sym_{t-1}) @ W_ih + h @ W_hh + b, no concat ----
        if t == 0:
            # input is the broadcast SOS embedding; sos @ W_ih + biases pre-folded.
            pre = jnp.dot(h, w_hh, preferred_element_type=jnp.float32) + sos_ih_b
        else:
            pre = (jnp.dot(onehot, emb_w_ih, preferred_element_type=jnp.float32)
                   + jnp.dot(h, w_hh, preferred_element_type=jnp.float32)
                   + b_comb)
        h = jnp.tanh(pre)

        raw = jnp.dot(h, w_out, preferred_element_type=jnp.float32) + b_out_b    # (B, V)

        # ---- sampling critical path: Gumbel-max on raw logits (shift-invariant) ----
        scores = raw + gumbel_ref[t]                                              # (B, V)
        sm = jnp.max(scores, axis=-1, keepdims=True)
        symbols = jnp.min(jnp.where(scores >= sm, lane_idx, V),
                          axis=-1, keepdims=True)                                 # (B,1) i32
        onehot = (lane_idx == symbols).astype(jnp.float32)                        # (B, V)

        # ---- side branch (does NOT feed the recurrence): log_softmax / entropy / logp ----
        m = jnp.max(raw, axis=-1, keepdims=True)
        shifted = raw - m
        ex = jnp.exp(shifted)
        z = jnp.sum(ex, axis=-1, keepdims=True)
        step_logits = shifted - jnp.log(z)                                        # (B, V)
        probs = ex / z
        ent_t = -jnp.sum(probs * step_logits, axis=-1, keepdims=True)             # (B, 1)
        # TODO(synk): reference calls distr.log_prob(x) (the raw agent input), which is
        # shape-inconsistent (a bug in the reference); standard REINFORCE log_prob(symbol) used.
        logp_t = jnp.sum(step_logits * onehot, axis=-1, keepdims=True)            # (B, 1)

        sel = col_idx == t
        seq_acc = jnp.where(sel, symbols, seq_acc)
        logp_acc = jnp.where(sel, logp_t, logp_acc)
        ent_acc = jnp.where(sel, ent_t, ent_acc)

    seq_ref[...] = seq_acc
    logp_ref[...] = logp_acc
    ent_ref[...] = ent_acc


def rnn_sender_forward(params, x, key):
    B, F = x.shape
    assert B % BATCH_TILE == 0
    bt = BATCH_TILE
    # Pre-drawn Gumbel noise (training-path Categorical.sample via Gumbel-max), one shot
    # for all steps -> nothing random on the kernel's per-step serial path.
    gumbel = jax.random.gumbel(key, (MAX_LEN, B, VOCAB), dtype=jnp.float32)

    def row2(shape):   # batch-tiled 2-D operand
        return pl.BlockSpec(shape, lambda i: (i, 0))

    def full(shape):   # whole-array operand, same block every grid step
        return pl.BlockSpec(shape, lambda i: tuple(0 for _ in shape))

    # All resident data is tiny (<64 KiB), so one whole-array VMEM block per operand; the
    # batch grid axis exists so realistic batches shard across TensorCores (v7x megacore).
    return pl.pallas_call(
        rnn_sender_kernel,
        out_shape=(
            jax.ShapeDtypeStruct((B, MAX_LEN + 1), jnp.int32),
            jax.ShapeDtypeStruct((B, MAX_LEN + 1), jnp.float32),
            jax.ShapeDtypeStruct((B, MAX_LEN + 1), jnp.float32),
        ),
        grid=(B // bt,),
        in_specs=[
            row2((bt, F)),                                             # x
            pl.BlockSpec((MAX_LEN, bt, VOCAB), lambda i: (0, i, 0)),   # gumbel noise
            full((N_FEATURES, HIDDEN)), full((1, HIDDEN)),             # agent Linear
            full((EMBED, HIDDEN)), full((1, HIDDEN)),                  # RNNCell W_ih, b_ih
            full((HIDDEN, HIDDEN)), full((1, HIDDEN)),                 # RNNCell W_hh, b_hh
            full((HIDDEN, VOCAB)), full((1, VOCAB)),                   # hidden_to_output
            full((VOCAB, EMBED)), full((1, EMBED)),                    # embedding, sos
        ],
        out_specs=(
            pl.BlockSpec((bt, MAX_LEN + 1), lambda i: (i, 0)),
            pl.BlockSpec((bt, MAX_LEN + 1), lambda i: (i, 0)),
            pl.BlockSpec((bt, MAX_LEN + 1), lambda i: (i, 0)),
        ),
        compiler_params=pltpu.CompilerParams(
            dimension_semantics=("parallel",)),
    )(x, gumbel,
      params["w_agent"], params["b_agent"],
      params["w_ih"], params["b_ih"], params["w_hh"], params["b_hh"],
      params["w_out"], params["b_out"],
      params["embedding"], params["sos"])


def init_params(key):
    ks = jax.random.split(key, 8)
    s_h = 1.0 / float(jnp.sqrt(jnp.float32(HIDDEN)))
    s_f = 1.0 / float(jnp.sqrt(jnp.float32(N_FEATURES)))
    return {
        "w_agent":   jax.random.uniform(ks[0], (N_FEATURES, HIDDEN), jnp.float32, -s_f, s_f),
        "b_agent":   jnp.zeros((1, HIDDEN), jnp.float32),
        "w_ih":      jax.random.uniform(ks[1], (EMBED, HIDDEN), jnp.float32, -s_h, s_h),
        "b_ih":      jax.random.uniform(ks[2], (1, HIDDEN), jnp.float32, -s_h, s_h),
        "w_hh":      jax.random.uniform(ks[3], (HIDDEN, HIDDEN), jnp.float32, -s_h, s_h),
        "b_hh":      jax.random.uniform(ks[4], (1, HIDDEN), jnp.float32, -s_h, s_h),
        "w_out":     jax.random.uniform(ks[5], (HIDDEN, VOCAB), jnp.float32, -s_h, s_h),
        "b_out":     jnp.zeros((1, VOCAB), jnp.float32),
        "embedding": jax.random.normal(ks[6], (VOCAB, EMBED), jnp.float32),
        "sos":       0.01 * jax.random.normal(ks[7], (1, EMBED), jnp.float32),
    }


if __name__ == "__main__":
    key = jax.random.PRNGKey(0)
    kp, kx, kg = jax.random.split(key, 3)
    params = init_params(kp)
    x = jax.random.uniform(kx, (BATCH, N_FEATURES), jnp.float32, -0.1, 0.1)

    sequence, logprobs, entropy = jax.jit(rnn_sender_forward)(params, x, kg)
    jax.block_until_ready((sequence, logprobs, entropy))

    assert sequence.shape == (BATCH, MAX_LEN + 1)
    assert logprobs.shape == (BATCH, MAX_LEN + 1)
    assert entropy.shape == (BATCH, MAX_LEN + 1)
    assert bool(jnp.all(sequence[:, -1] == 0))
    assert bool(jnp.all(entropy[:, -1] == 0.0))
    assert bool(jnp.all(entropy[:, :-1] >= 0.0))
    assert bool(jnp.all((sequence[:, :-1] >= 0) & (sequence[:, :-1] < VOCAB)))
    assert bool(jnp.all(logprobs[:, :-1] <= 0.0))
    print("KERNEL_OK")
</pallas_src>

<mosaic_0001>
module attributes {stable_mosaic.version = 11 : i64} {
  func.func @rnn_sender_kernel(%arg0: i32, %arg1: memref<8x16xf32, #tpu.memory_space<vmem>>, %arg2: memref<8x8x16xf32, #tpu.memory_space<vmem>>, %arg3: memref<16x32xf32, #tpu.memory_space<vmem>>, %arg4: memref<1x32xf32, #tpu.memory_space<vmem>>, %arg5: memref<16x32xf32, #tpu.memory_space<vmem>>, %arg6: memref<1x32xf32, #tpu.memory_space<vmem>>, %arg7: memref<32x32xf32, #tpu.memory_space<vmem>>, %arg8: memref<1x32xf32, #tpu.memory_space<vmem>>, %arg9: memref<32x16xf32, #tpu.memory_space<vmem>>, %arg10: memref<1x16xf32, #tpu.memory_space<vmem>>, %arg11: memref<16x16xf32, #tpu.memory_space<vmem>>, %arg12: memref<1x16xf32, #tpu.memory_space<vmem>>, %arg13: memref<8x9xi32, #tpu.memory_space<vmem>>, %arg14: memref<8x9xf32, #tpu.memory_space<vmem>>, %arg15: memref<8x9xf32, #tpu.memory_space<vmem>>) attributes {dimension_semantics = [#tpu.dimension_semantics<parallel>], iteration_bounds = array<i64: 1>, scalar_prefetch = 0 : i64, scratch_operands = 0 : i64, tpu.core_type = #tpu.core_type<tc>, window_params = [{transform_indices = @transform_0, window_bounds = array<i64: 8, 16>}, {transform_indices = @transform_1, window_bounds = array<i64: 8, 8, 16>}, {pipeline_mode = #tpu.pipeline_mode<synchronous>, transform_indices = @transform_2, window_bounds = array<i64: 16, 32>}, {pipeline_mode = #tpu.pipeline_mode<synchronous>, transform_indices = @transform_3, window_bounds = array<i64: 1, 32>}, {pipeline_mode = #tpu.pipeline_mode<synchronous>, transform_indices = @transform_4, window_bounds = array<i64: 16, 32>}, {pipeline_mode = #tpu.pipeline_mode<synchronous>, transform_indices = @transform_5, window_bounds = array<i64: 1, 32>}, {pipeline_mode = #tpu.pipeline_mode<synchronous>, transform_indices = @transform_6, window_bounds = array<i64: 32, 32>}, {pipeline_mode = #tpu.pipeline_mode<synchronous>, transform_indices = @transform_7, window_bounds = array<i64: 1, 32>}, {pipeline_mode = #tpu.pipeline_mode<synchronous>, transform_indices = @transform_8, window_bounds = array<i64: 32, 16>}, {pipeline_mode = #tpu.pipeline_mode<synchronous>, transform_indices = @transform_9, window_bounds = array<i64: 1, 16>}, {pipeline_mode = #tpu.pipeline_mode<synchronous>, transform_indices = @transform_10, window_bounds = array<i64: 16, 16>}, {pipeline_mode = #tpu.pipeline_mode<synchronous>, transform_indices = @transform_11, window_bounds = array<i64: 1, 16>}, {transform_indices = @transform_12, window_bounds = array<i64: 8, 9>}, {transform_indices = @transform_13, window_bounds = array<i64: 8, 9>}, {transform_indices = @transform_14, window_bounds = array<i64: 8, 9>}]} {
    %c0 = arith.constant 0 : index
    %c0_0 = arith.constant 0 : index
    %0 = vector.load %arg1[%c0, %c0_0] : memref<8x16xf32, #tpu.memory_space<vmem>>, vector<8x16xf32>
    %c0_1 = arith.constant 0 : index
    %c0_2 = arith.constant 0 : index
    %1 = vector.load %arg5[%c0_1, %c0_2] : memref<16x32xf32, #tpu.memory_space<vmem>>, vector<16x32xf32>
    %c0_3 = arith.constant 0 : index
    %c0_4 = arith.constant 0 : index
    %2 = vector.load %arg7[%c0_3, %c0_4] : memref<32x32xf32, #tpu.memory_space<vmem>>, vector<32x32xf32>
    %c0_5 = arith.constant 0 : index
    %c0_6 = arith.constant 0 : index
    %3 = vector.load %arg11[%c0_5, %c0_6] : memref<16x16xf32, #tpu.memory_space<vmem>>, vector<16x16xf32>
    %cst = arith.constant dense<0.000000e+00> : vector<16x32xf32>
    %4 = tpu.matmul %3, %1, %cst {dimension_numbers = #tpu.dot_dimension_numbers<[1], [0], [0], [1], [0, 0, 1, 1], [], []>} : vector<16x16xf32>, vector<16x32xf32>, vector<16x32xf32> -> vector<16x32xf32>
    %c0_7 = arith.constant 0 : index
    %c0_8 = arith.constant 0 : index
    %5 = vector.load %arg6[%c0_7, %c0_8] : memref<1x32xf32, #tpu.memory_space<vmem>>, vector<1x32xf32>
    %c0_9 = arith.constant 0 : index
    %c0_10 = arith.constant 0 : index
    %6 = vector.load %arg8[%c0_9, %c0_10] : memref<1x32xf32, #tpu.memory_space<vmem>>, vector<1x32xf32>
    %7 = arith.addf %5, %6 : vector<1x32xf32>
    %8 = vector.shape_cast %7 : vector<1x32xf32> to vector<1x32xf32>
    %9 = vector.broadcast %8 : vector<1x32xf32> to vector<8x32xf32>
    %c0_11 = arith.constant 0 : index
    %c0_12 = arith.constant 0 : index
    %10 = vector.load %arg12[%c0_11, %c0_12] : memref<1x16xf32, #tpu.memory_space<vmem>>, vector<1x16xf32>
    %cst_13 = arith.constant dense<0.000000e+00> : vector<1x32xf32>
    %11 = tpu.matmul %10, %1, %cst_13 {dimension_numbers = #tpu.dot_dimension_numbers<[1], [0], [0], [1], [0, 0, 1, 1], [], []>} : vector<1x16xf32>, vector<16x32xf32>, vector<1x32xf32> -> vector<1x32xf32>
    %12 = vector.shape_cast %11 : vector<1x32xf32> to vector<1x32xf32>
    %13 = vector.broadcast %12 : vector<1x32xf32> to vector<8x32xf32>
    %14 = arith.addf %13, %9 : vector<8x32xf32>
    %c0_14 = arith.constant 0 : index
    %c0_15 = arith.constant 0 : index
    %15 = vector.load %arg9[%c0_14, %c0_15] : memref<32x16xf32, #tpu.memory_space<vmem>>, vector<32x16xf32>
    %c0_16 = arith.constant 0 : index
    %c0_17 = arith.constant 0 : index
    %16 = vector.load %arg10[%c0_16, %c0_17] : memref<1x16xf32, #tpu.memory_space<vmem>>, vector<1x16xf32>
    %17 = vector.shape_cast %16 : vector<1x16xf32> to vector<1x16xf32>
    %18 = vector.broadcast %17 : vector<1x16xf32> to vector<8x16xf32>
    %c0_18 = arith.constant 0 : index
    %c0_19 = arith.constant 0 : index
    %19 = vector.load %arg3[%c0_18, %c0_19] : memref<16x32xf32, #tpu.memory_space<vmem>>, vector<16x32xf32>
    %cst_20 = arith.constant dense<0.000000e+00> : vector<8x32xf32>
    %20 = tpu.matmul %0, %19, %cst_20 {dimension_numbers = #tpu.dot_dimension_numbers<[1], [0], [0], [1], [0, 0, 1, 1], [], []>} : vector<8x16xf32>, vector<16x32xf32>, vector<8x32xf32> -> vector<8x32xf32>
    %c0_21 = arith.constant 0 : index
    %c0_22 = arith.constant 0 : index
    %21 = vector.load %arg4[%c0_21, %c0_22] : memref<1x32xf32, #tpu.memory_space<vmem>>, vector<1x32xf32>
    %22 = vector.shape_cast %21 : vector<1x32xf32> to vector<1x32xf32>
    %23 = vector.broadcast %22 : vector<1x32xf32> to vector<8x32xf32>
    %24 = arith.addf %20, %23 : vector<8x32xf32>
    %25 = tpu.iota {dimensions = array<i32: 1>} : vector<8x16xi32>
    %26 = tpu.iota {dimensions = array<i32: 1>} : vector<8x9xi32>
    %c0_i32 = arith.constant 0 : i32
    %27 = vector.broadcast %c0_i32 : i32 to vector<8x9xi32>
    %cst_23 = arith.constant 0.000000e+00 : f32
    %28 = vector.broadcast %cst_23 : f32 to vector<8x9xf32>
    %cst_24 = arith.constant 0.000000e+00 : f32
    %29 = vector.broadcast %cst_24 : f32 to vector<8x9xf32>
    %cst_25 = arith.constant dense<0.000000e+00> : vector<8x32xf32>
    %30 = tpu.matmul %24, %2, %cst_25 {dimension_numbers = #tpu.dot_dimension_numbers<[1], [0], [0], [1], [0, 0, 1, 1], [], []>} : vector<8x32xf32>, vector<32x32xf32>, vector<8x32xf32> -> vector<8x32xf32>
    %31 = arith.addf %30, %14 : vector<8x32xf32>
    %32 = math.tanh %31 : vector<8x32xf32>
    %cst_26 = arith.constant dense<0.000000e+00> : vector<8x16xf32>
    %33 = tpu.matmul %32, %15, %cst_26 {dimension_numbers = #tpu.dot_dimension_numbers<[1], [0], [0], [1], [0, 0, 1, 1], [], []>} : vector<8x32xf32>, vector<32x16xf32>, vector<8x16xf32> -> vector<8x16xf32>
    %34 = arith.addf %33, %18 : vector<8x16xf32>
    %c0_27 = arith.constant 0 : index
    %c0_28 = arith.constant 0 : index
    %c0_29 = arith.constant 0 : index
    %35 = vector.load %arg2[%c0_27, %c0_28, %c0_29] : memref<8x8x16xf32, #tpu.memory_space<vmem>>, vector<1x8x16xf32>
    %36 = vector.shape_cast %35 : vector<1x8x16xf32> to vector<8x16xf32>
    %37 = arith.addf %34, %36 : vector<8x16xf32>
    %cst_30 = arith.constant dense<0xFF800000> : vector<8xf32>
    %38 = vector.multi_reduction <maximumf>, %37, %cst_30 [1] : vector<8x16xf32> to vector<8xf32>
    %39 = vector.shape_cast %38 : vector<8xf32> to vector<8x1xf32>
    %40 = vector.broadcast %39 : vector<8x1xf32> to vector<8x16xf32>
    %41 = arith.cmpf oge, %37, %40 : vector<8x16xf32>
    %c16_i32 = arith.constant 16 : i32
    %42 = vector.broadcast %c16_i32 : i32 to vector<8x16xi32>
    %43 = arith.select %41, %25, %42 : vector<8x16xi1>, vector<8x16xi32>
    %cst_31 = arith.constant dense<2147483647> : vector<8xi32>
    %44 = vector.multi_reduction <minsi>, %43, %cst_31 [1] : vector<8x16xi32> to vector<8xi32>
    %45 = vector.shape_cast %44 : vector<8xi32> to vector<8x1xi32>
    %46 = vector.broadcast %45 : vector<8x1xi32> to vector<8x16xi32>
    %47 = arith.cmpi eq, %25, %46 : vector<8x16xi32>
    %48 = arith.extui %47 : vector<8x16xi1> to vector<8x16xi32>
    %49 = arith.sitofp %48 : vector<8x16xi32> to vector<8x16xf32>
    %cst_32 = arith.constant dense<0xFF800000> : vector<8xf32>
    %50 = vector.multi_reduction <maximumf>, %34, %cst_32 [1] : vector<8x16xf32> to vector<8xf32>
    %51 = vector.shape_cast %50 : vector<8xf32> to vector<8x1xf32>
    %52 = vector.broadcast %51 : vector<8x1xf32> to vector<8x16xf32>
    %53 = arith.subf %34, %52 : vector<8x16xf32>
    %54 = math.exp %53 : vector<8x16xf32>
    %cst_33 = arith.constant dense<0.000000e+00> : vector<8xf32>
    %55 = vector.multi_reduction <add>, %54, %cst_33 [1] : vector<8x16xf32> to vector<8xf32>
    %56 = vector.shape_cast %55 : vector<8xf32> to vector<8x1xf32>
    %57 = math.log %56 : vector<8x1xf32>
    %58 = vector.broadcast %57 : vector<8x1xf32> to vector<8x16xf32>
    %59 = arith.subf %53, %58 : vector<8x16xf32>
    %60 = vector.broadcast %56 : vector<8x1xf32> to vector<8x16xf32>
    %61 = arith.divf %54, %60 : vector<8x16xf32>
    %62 = arith.mulf %61, %59 : vector<8x16xf32>
    %cst_34 = arith.constant dense<0.000000e+00> : vector<8xf32>
    %63 = vector.multi_reduction <add>, %62, %cst_34 [1] : vector<8x16xf32> to vector<8xf32>
    %64 = vector.shape_cast %63 : vector<8xf32> to vector<8x1xf32>
    %cst_35 = arith.constant 0.000000e+00 : f32
    %65 = vector.broadcast %cst_35 : f32 to vector<8x1xf32>
    %66 = arith.subf %65, %64 : vector<8x1xf32>
    %67 = arith.mulf %59, %49 : vector<8x16xf32>
    %cst_36 = arith.constant dense<0.000000e+00> : vector<8xf32>
    %68 = vector.multi_reduction <add>, %67, %cst_36 [1] : vector<8x16xf32> to vector<8xf32>
    %69 = vector.shape_cast %68 : vector<8xf32> to vector<8x1xf32>
    %c0_i32_37 = arith.constant 0 : i32
    %70 = vector.broadcast %c0_i32_37 : i32 to vector<8x9xi32>
    %71 = arith.cmpi eq, %26, %70 : vector<8x9xi32>
    %72 = vector.shape_cast %45 : vector<8x1xi32> to vector<8x1xi32>
    %73 = vector.broadcast %72 : vector<8x1xi32> to vector<8x9xi32>
    %74 = arith.select %71, %73, %27 : vector<8x9xi1>, vector<8x9xi32>
    %75 = vector.shape_cast %69 : vector<8x1xf32> to vector<8x1xf32>
    %76 = vector.broadcast %75 : vector<8x1xf32> to vector<8x9xf32>
    %77 = arith.select %71, %76, %28 : vector<8x9xi1>, vector<8x9xf32>
    %78 = vector.shape_cast %66 : vector<8x1xf32> to vector<8x1xf32>
    %79 = vector.broadcast %78 : vector<8x1xf32> to vector<8x9xf32>
    %80 = arith.select %71, %79, %29 : vector<8x9xi1>, vector<8x9xf32>
    %cst_38 = arith.constant dense<0.000000e+00> : vector<8x32xf32>
    %81 = tpu.matmul %49, %4, %cst_38 {dimension_numbers = #tpu.dot_dimension_numbers<[1], [0], [0], [1], [0, 0, 1, 1], [], []>} : vector<8x16xf32>, vector<16x32xf32>, vector<8x32xf32> -> vector<8x32xf32>
    %cst_39 = arith.constant dense<0.000000e+00> : vector<8x32xf32>
    %82 = tpu.matmul %32, %2, %cst_39 {dimension_numbers = #tpu.dot_dimension_numbers<[1], [0], [0], [1], [0, 0, 1, 1], [], []>} : vector<8x32xf32>, vector<32x32xf32>, vector<8x32xf32> -> vector<8x32xf32>
    %83 = arith.addf %81, %82 : vector<8x32xf32>
    %84 = arith.addf %83, %9 : vector<8x32xf32>
    %85 = math.tanh %84 : vector<8x32xf32>
    %cst_40 = arith.constant dense<0.000000e+00> : vector<8x16xf32>
    %86 = tpu.matmul %85, %15, %cst_40 {dimension_numbers = #tpu.dot_dimension_numbers<[1], [0], [0], [1], [0, 0, 1, 1], [], []>} : vector<8x32xf32>, vector<32x16xf32>, vector<8x16xf32> -> vector<8x16xf32>
    %87 = arith.addf %86, %18 : vector<8x16xf32>
    %c1 = arith.constant 1 : index
    %c0_41 = arith.constant 0 : index
    %c0_42 = arith.constant 0 : index
    %88 = vector.load %arg2[%c1, %c0_41, %c0_42] : memref<8x8x16xf32, #tpu.memory_space<vmem>>, vector<1x8x16xf32>
    %89 = vector.shape_cast %88 : vector<1x8x16xf32> to vector<8x16xf32>
    %90 = arith.addf %87, %89 : vector<8x16xf32>
    %cst_43 = arith.constant dense<0xFF800000> : vector<8xf32>
    %91 = vector.multi_reduction <maximumf>, %90, %cst_43 [1] : vector<8x16xf32> to vector<8xf32>
    %92 = vector.shape_cast %91 : vector<8xf32> to vector<8x1xf32>
    %93 = vector.broadcast %92 : vector<8x1xf32> to vector<8x16xf32>
    %94 = arith.cmpf oge, %90, %93 : vector<8x16xf32>
    %c16_i32_44 = arith.constant 16 : i32
    %95 = vector.broadcast %c16_i32_44 : i32 to vector<8x16xi32>
    %96 = arith.select %94, %25, %95 : vector<8x16xi1>, vector<8x16xi32>
    %cst_45 = arith.constant dense<2147483647> : vector<8xi32>
    %97 = vector.multi_reduction <minsi>, %96, %cst_45 [1] : vector<8x16xi32> to vector<8xi32>
    %98 = vector.shape_cast %97 : vector<8xi32> to vector<8x1xi32>
    %99 = vector.broadcast %98 : vector<8x1xi32> to vector<8x16xi32>
    %100 = arith.cmpi eq, %25, %99 : vector<8x16xi32>
    %101 = arith.extui %100 : vector<8x16xi1> to vector<8x16xi32>
    %102 = arith.sitofp %101 : vector<8x16xi32> to vector<8x16xf32>
    %cst_46 = arith.constant dense<0xFF800000> : vector<8xf32>
    %103 = vector.multi_reduction <maximumf>, %87, %cst_46 [1] : vector<8x16xf32> to vector<8xf32>
    %104 = vector.shape_cast %103 : vector<8xf32> to vector<8x1xf32>
    %105 = vector.broadcast %104 : vector<8x1xf32> to vector<8x16xf32>
    %106 = arith.subf %87, %105 : vector<8x16xf32>
    %107 = math.exp %106 : vector<8x16xf32>
    %cst_47 = arith.constant dense<0.000000e+00> : vector<8xf32>
    %108 = vector.multi_reduction <add>, %107, %cst_47 [1] : vector<8x16xf32> to vector<8xf32>
    %109 = vector.shape_cast %108 : vector<8xf32> to vector<8x1xf32>
    %110 = math.log %109 : vector<8x1xf32>
    %111 = vector.broadcast %110 : vector<8x1xf32> to vector<8x16xf32>
    %112 = arith.subf %106, %111 : vector<8x16xf32>
    %113 = vector.broadcast %109 : vector<8x1xf32> to vector<8x16xf32>
    %114 = arith.divf %107, %113 : vector<8x16xf32>
    %115 = arith.mulf %114, %112 : vector<8x16xf32>
    %cst_48 = arith.constant dense<0.000000e+00> : vector<8xf32>
    %116 = vector.multi_reduction <add>, %115, %cst_48 [1] : vector<8x16xf32> to vector<8xf32>
    %117 = vector.shape_cast %116 : vector<8xf32> to vector<8x1xf32>
    %cst_49 = arith.constant 0.000000e+00 : f32
    %118 = vector.broadcast %cst_49 : f32 to vector<8x1xf32>
    %119 = arith.subf %118, %117 : vector<8x1xf32>
    %120 = arith.mulf %112, %102 : vector<8x16xf32>
    %cst_50 = arith.constant dense<0.000000e+00> : vector<8xf32>
    %121 = vector.multi_reduction <add>, %120, %cst_50 [1] : vector<8x16xf32> to vector<8xf32>
    %122 = vector.shape_cast %121 : vector<8xf32> to vector<8x1xf32>
    %c1_i32 = arith.constant 1 : i32
    %123 = vector.broadcast %c1_i32 : i32 to vector<8x9xi32>
    %124 = arith.cmpi eq, %26, %123 : vector<8x9xi32>
    %125 = vector.shape_cast %98 : vector<8x1xi32> to vector<8x1xi32>
    %126 = vector.broadcast %125 : vector<8x1xi32> to vector<8x9xi32>
    %127 = arith.select %124, %126, %74 : vector<8x9xi1>, vector<8x9xi32>
    %128 = vector.shape_cast %122 : vector<8x1xf32> to vector<8x1xf32>
    %129 = vector.broadcast %128 : vector<8x1xf32> to vector<8x9xf32>
    %130 = arith.select %124, %129, %77 : vector<8x9xi1>, vector<8x9xf32>
    %131 = vector.shape_cast %119 : vector<8x1xf32> to vector<8x1xf32>
    %132 = vector.broadcast %131 : vector<8x1xf32> to vector<8x9xf32>
    %133 = arith.select %124, %132, %80 : vector<8x9xi1>, vector<8x9xf32>
    %cst_51 = arith.constant dense<0.000000e+00> : vector<8x32xf32>
    %134 = tpu.matmul %102, %4, %cst_51 {dimension_numbers = #tpu.dot_dimension_numbers<[1], [0], [0], [1], [0, 0, 1, 1], [], []>} : vector<8x16xf32>, vector<16x32xf32>, vector<8x32xf32> -> vector<8x32xf32>
    %cst_52 = arith.constant dense<0.000000e+00> : vector<8x32xf32>
    %135 = tpu.matmul %85, %2, %cst_52 {dimension_numbers = #tpu.dot_dimension_numbers<[1], [0], [0], [1], [0, 0, 1, 1], [], []>} : vector<8x32xf32>, vector<32x32xf32>, vector<8x32xf32> -> vector<8x32xf32>
    %136 = arith.addf %134, %135 : vector<8x32xf32>
    %137 = arith.addf %136, %9 : vector<8x32xf32>
    %138 = math.tanh %137 : vector<8x32xf32>
    %cst_53 = arith.constant dense<0.000000e+00> : vector<8x16xf32>
    %139 = tpu.matmul %138, %15, %cst_53 {dimension_numbers = #tpu.dot_dimension_numbers<[1], [0], [0], [1], [0, 0, 1, 1], [], []>} : vector<8x32xf32>, vector<32x16xf32>, vector<8x16xf32> -> vector<8x16xf32>
    %140 = arith.addf %139, %18 : vector<8x16xf32>
    %c2 = arith.constant 2 : index
    %c0_54 = arith.constant 0 : index
    %c0_55 = arith.constant 0 : index
    %141 = vector.load %arg2[%c2, %c0_54, %c0_55] : memref<8x8x16xf32, #tpu.memory_space<vmem>>, vector<1x8x16xf32>
    %142 = vector.shape_cast %141 : vector<1x8x16xf32> to vector<8x16xf32>
    %143 = arith.addf %140, %142 : vector<8x16xf32>
    %cst_56 = arith.constant dense<0xFF800000> : vector<8xf32>
    %144 = vector.multi_reduction <maximumf>, %143, %cst_56 [1] : vector<8x16xf32> to vector<8xf32>
    %145 = vector.shape_cast %144 : vector<8xf32> to vector<8x1xf32>
    %146 = vector.broadcast %145 : vector<8x1xf32> to vector<8x16xf32>
    %147 = arith.cmpf oge, %143, %146 : vector<8x16xf32>
    %c16_i32_57 = arith.constant 16 : i32
    %148 = vector.broadcast %c16_i32_57 : i32 to vector<8x16xi32>
    %149 = arith.select %147, %25, %148 : vector<8x16xi1>, vector<8x16xi32>
    %cst_58 = arith.constant dense<2147483647> : vector<8xi32>
    %150 = vector.multi_reduction <minsi>, %149, %cst_58 [1] : vector<8x16xi32> to vector<8xi32>
    %151 = vector.shape_cast %150 : vector<8xi32> to vector<8x1xi32>
    %152 = vector.broadcast %151 : vector<8x1xi32> to vector<8x16xi32>
    %153 = arith.cmpi eq, %25, %152 : vector<8x16xi32>
    %154 = arith.extui %153 : vector<8x16xi1> to vector<8x16xi32>
    %155 = arith.sitofp %154 : vector<8x16xi32> to vector<8x16xf32>
    %cst_59 = arith.constant dense<0xFF800000> : vector<8xf32>
    %156 = vector.multi_reduction <maximumf>, %140, %cst_59 [1] : vector<8x16xf32> to vector<8xf32>
    %157 = vector.shape_cast %156 : vector<8xf32> to vector<8x1xf32>
    %158 = vector.broadcast %157 : vector<8x1xf32> to vector<8x16xf32>
    %159 = arith.subf %140, %158 : vector<8x16xf32>
    %160 = math.exp %159 : vector<8x16xf32>
    %cst_60 = arith.constant dense<0.000000e+00> : vector<8xf32>
    %161 = vector.multi_reduction <add>, %160, %cst_60 [1] : vector<8x16xf32> to vector<8xf32>
    %162 = vector.shape_cast %161 : vector<8xf32> to vector<8x1xf32>
    %163 = math.log %162 : vector<8x1xf32>
    %164 = vector.broadcast %163 : vector<8x1xf32> to vector<8x16xf32>
    %165 = arith.subf %159, %164 : vector<8x16xf32>
    %166 = vector.broadcast %162 : vector<8x1xf32> to vector<8x16xf32>
    %167 = arith.divf %160, %166 : vector<8x16xf32>
    %168 = arith.mulf %167, %165 : vector<8x16xf32>
    %cst_61 = arith.constant dense<0.000000e+00> : vector<8xf32>
    %169 = vector.multi_reduction <add>, %168, %cst_61 [1] : vector<8x16xf32> to vector<8xf32>
    %170 = vector.shape_cast %169 : vector<8xf32> to vector<8x1xf32>
    %cst_62 = arith.constant 0.000000e+00 : f32
    %171 = vector.broadcast %cst_62 : f32 to vector<8x1xf32>
    %172 = arith.subf %171, %170 : vector<8x1xf32>
    %173 = arith.mulf %165, %155 : vector<8x16xf32>
    %cst_63 = arith.constant dense<0.000000e+00> : vector<8xf32>
    %174 = vector.multi_reduction <add>, %173, %cst_63 [1] : vector<8x16xf32> to vector<8xf32>
    %175 = vector.shape_cast %174 : vector<8xf32> to vector<8x1xf32>
    %c2_i32 = arith.constant 2 : i32
    %176 = vector.broadcast %c2_i32 : i32 to vector<8x9xi32>
    %177 = arith.cmpi eq, %26, %176 : vector<8x9xi32>
    %178 = vector.shape_cast %151 : vector<8x1xi32> to vector<8x1xi32>
    %179 = vector.broadcast %178 : vector<8x1xi32> to vector<8x9xi32>
    %180 = arith.select %177, %179, %127 : vector<8x9xi1>, vector<8x9xi32>
    %181 = vector.shape_cast %175 : vector<8x1xf32> to vector<8x1xf32>
    %182 = vector.broadcast %181 : vector<8x1xf32> to vector<8x9xf32>
    %183 = arith.select %177, %182, %130 : vector<8x9xi1>, vector<8x9xf32>
    %184 = vector.shape_cast %172 : vector<8x1xf32> to vector<8x1xf32>
    %185 = vector.broadcast %184 : vector<8x1xf32> to vector<8x9xf32>
    %186 = arith.select %177, %185, %133 : vector<8x9xi1>, vector<8x9xf32>
    %cst_64 = arith.constant dense<0.000000e+00> : vector<8x32xf32>
    %187 = tpu.matmul %155, %4, %cst_64 {dimension_numbers = #tpu.dot_dimension_numbers<[1], [0], [0], [1], [0, 0, 1, 1], [], []>} : vector<8x16xf32>, vector<16x32xf32>, vector<8x32xf32> -> vector<8x32xf32>
    %cst_65 = arith.constant dense<0.000000e+00> : vector<8x32xf32>
    %188 = tpu.matmul %138, %2, %cst_65 {dimension_numbers = #tpu.dot_dimension_numbers<[1], [0], [0], [1], [0, 0, 1, 1], [], []>} : vector<8x32xf32>, vector<32x32xf32>, vector<8x32xf32> -> vector<8x32xf32>
    %189 = arith.addf %187, %188 : vector<8x32xf32>
    %190 = arith.addf %189, %9 : vector<8x32xf32>
    %191 = math.tanh %190 : vector<8x32xf32>
    %cst_66 = arith.constant dense<0.000000e+00> : vector<8x16xf32>
    %192 = tpu.matmul %191, %15, %cst_66 {dimension_numbers = #tpu.dot_dimension_numbers<[1], [0], [0], [1], [0, 0, 1, 1], [], []>} : vector<8x32xf32>, vector<32x16xf32>, vector<8x16xf32> -> vector<8x16xf32>
    %193 = arith.addf %192, %18 : vector<8x16xf32>
    %c3 = arith.constant 3 : index
    %c0_67 = arith.constant 0 : index
    %c0_68 = arith.constant 0 : index
    %194 = vector.load %arg2[%c3, %c0_67, %c0_68] : memref<8x8x16xf32, #tpu.memory_space<vmem>>, vector<1x8x16xf32>
    %195 = vector.shape_cast %194 : vector<1x8x16xf32> to vector<8x16xf32>
    %196 = arith.addf %193, %195 : vector<8x16xf32>
    %cst_69 = arith.constant dense<0xFF800000> : vector<8xf32>
    %197 = vector.multi_reduction <maximumf>, %196, %cst_69 [1] : vector<8x16xf32> to vector<8xf32>
    %198 = vector.shape_cast %197 : vector<8xf32> to vector<8x1xf32>
    %199 = vector.broadcast %198 : vector<8x1xf32> to vector<8x16xf32>
    %200 = arith.cmpf oge, %196, %199 : vector<8x16xf32>
    %c16_i32_70 = arith.constant 16 : i32
    %201 = vector.broadcast %c16_i32_70 : i32 to vector<8x16xi32>
    %202 = arith.select %200, %25, %201 : vector<8x16xi1>, vector<8x16xi32>
    %cst_71 = arith.constant dense<2147483647> : vector<8xi32>
    %203 = vector.multi_reduction <minsi>, %202, %cst_71 [1] : vector<8x16xi32> to vector<8xi32>
    %204 = vector.shape_cast %203 : vector<8xi32> to vector<8x1xi32>
    %205 = vector.broadcast %204 : vector<8x1xi32> to vector<8x16xi32>
    %206 = arith.cmpi eq, %25, %205 : vector<8x16xi32>
    %207 = arith.extui %206 : vector<8x16xi1> to vector<8x16xi32>
    %208 = arith.sitofp %207 : vector<8x16xi32> to vector<8x16xf32>
    %cst_72 = arith.constant dense<0xFF800000> : vector<8xf32>
    %209 = vector.multi_reduction <maximumf>, %193, %cst_72 [1] : vector<8x16xf32> to vector<8xf32>
    %210 = vector.shape_cast %209 : vector<8xf32> to vector<8x1xf32>
    %211 = vector.broadcast %210 : vector<8x1xf32> to vector<8x16xf32>
    %212 = arith.subf %193, %211 : vector<8x16xf32>
    %213 = math.exp %212 : vector<8x16xf32>
    %cst_73 = arith.constant dense<0.000000e+00> : vector<8xf32>
    %214 = vector.multi_reduction <add>, %213, %cst_73 [1] : vector<8x16xf32> to vector<8xf32>
    %215 = vector.shape_cast %214 : vector<8xf32> to vector<8x1xf32>
    %216 = math.log %215 : vector<8x1xf32>
    %217 = vector.broadcast %216 : vector<8x1xf32> to vector<8x16xf32>
    %218 = arith.subf %212, %217 : vector<8x16xf32>
    %219 = vector.broadcast %215 : vector<8x1xf32> to vector<8x16xf32>
    %220 = arith.divf %213, %219 : vector<8x16xf32>
    %221 = arith.mulf %220, %218 : vector<8x16xf32>
    %cst_74 = arith.constant dense<0.000000e+00> : vector<8xf32>
    %222 = vector.multi_reduction <add>, %221, %cst_74 [1] : vector<8x16xf32> to vector<8xf32>
    %223 = vector.shape_cast %222 : vector<8xf32> to vector<8x1xf32>
    %cst_75 = arith.constant 0.000000e+00 : f32
    %224 = vector.broadcast %cst_75 : f32 to vector<8x1xf32>
    %225 = arith.subf %224, %223 : vector<8x1xf32>
    %226 = arith.mulf %218, %208 : vector<8x16xf32>
    %cst_76 = arith.constant dense<0.000000e+00> : vector<8xf32>
    %227 = vector.multi_reduction <add>, %226, %cst_76 [1] : vector<8x16xf32> to vector<8xf32>
    %228 = vector.shape_cast %227 : vector<8xf32> to vector<8x1xf32>
    %c3_i32 = arith.constant 3 : i32
    %229 = vector.broadcast %c3_i32 : i32 to vector<8x9xi32>
    %230 = arith.cmpi eq, %26, %229 : vector<8x9xi32>
    %231 = vector.shape_cast %204 : vector<8x1xi32> to vector<8x1xi32>
    %232 = vector.broadcast %231 : vector<8x1xi32> to vector<8x9xi32>
    %233 = arith.select %230, %232, %180 : vector<8x9xi1>, vector<8x9xi32>
    %234 = vector.shape_cast %228 : vector<8x1xf32> to vector<8x1xf32>
    %235 = vector.broadcast %234 : vector<8x1xf32> to vector<8x9xf32>
    %236 = arith.select %230, %235, %183 : vector<8x9xi1>, vector<8x9xf32>
    %237 = vector.shape_cast %225 : vector<8x1xf32> to vector<8x1xf32>
    %238 = vector.broadcast %237 : vector<8x1xf32> to vector<8x9xf32>
    %239 = arith.select %230, %238, %186 : vector<8x9xi1>, vector<8x9xf32>
    %cst_77 = arith.constant dense<0.000000e+00> : vector<8x32xf32>
    %240 = tpu.matmul %208, %4, %cst_77 {dimension_numbers = #tpu.dot_dimension_numbers<[1], [0], [0], [1], [0, 0, 1, 1], [], []>} : vector<8x16xf32>, vector<16x32xf32>, vector<8x32xf32> -> vector<8x32xf32>
    %cst_78 = arith.constant dense<0.000000e+00> : vector<8x32xf32>
    %241 = tpu.matmul %191, %2, %cst_78 {dimension_numbers = #tpu.dot_dimension_numbers<[1], [0], [0], [1], [0, 0, 1, 1], [], []>} : vector<8x32xf32>, vector<32x32xf32>, vector<8x32xf32> -> vector<8x32xf32>
    %242 = arith.addf %240, %241 : vector<8x32xf32>
    %243 = arith.addf %242, %9 : vector<8x32xf32>
    %244 = math.tanh %243 : vector<8x32xf32>
    %cst_79 = arith.constant dense<0.000000e+00> : vector<8x16xf32>
    %245 = tpu.matmul %244, %15, %cst_79 {dimension_numbers = #tpu.dot_dimension_numbers<[1], [0], [0], [1], [0, 0, 1, 1], [], []>} : vector<8x32xf32>, vector<32x16xf32>, vector<8x16xf32> -> vector<8x16xf32>
    %246 = arith.addf %245, %18 : vector<8x16xf32>
    %c4 = arith.constant 4 : index
    %c0_80 = arith.constant 0 : index
    %c0_81 = arith.constant 0 : index
    %247 = vector.load %arg2[%c4, %c0_80, %c0_81] : memref<8x8x16xf32, #tpu.memory_space<vmem>>, vector<1x8x16xf32>
    %248 = vector.shape_cast %247 : vector<1x8x16xf32> to vector<8x16xf32>
    %249 = arith.addf %246, %248 : vector<8x16xf32>
    %cst_82 = arith.constant dense<0xFF800000> : vector<8xf32>
    %250 = vector.multi_reduction <maximumf>, %249, %cst_82 [1] : vector<8x16xf32> to vector<8xf32>
    %251 = vector.shape_cast %250 : vector<8xf32> to vector<8x1xf32>
    %252 = vector.broadcast %251 : vector<8x1xf32> to vector<8x16xf32>
    %253 = arith.cmpf oge, %249, %252 : vector<8x16xf32>
    %c16_i32_83 = arith.constant 16 : i32
    %254 = vector.broadcast %c16_i32_83 : i32 to vector<8x16xi32>
    %255 = arith.select %253, %25, %254 : vector<8x16xi1>, vector<8x16xi32>
    %cst_84 = arith.constant dense<2147483647> : vector<8xi32>
    %256 = vector.multi_reduction <minsi>, %255, %cst_84 [1] : vector<8x16xi32> to vector<8xi32>
    %257 = vector.shape_cast %256 : vector<8xi32> to vector<8x1xi32>
    %258 = vector.broadcast %257 : vector<8x1xi32> to vector<8x16xi32>
    %259 = arith.cmpi eq, %25, %258 : vector<8x16xi32>
    %260 = arith.extui %259 : vector<8x16xi1> to vector<8x16xi32>
    %261 = arith.sitofp %260 : vector<8x16xi32> to vector<8x16xf32>
    %cst_85 = arith.constant dense<0xFF800000> : vector<8xf32>
    %262 = vector.multi_reduction <maximumf>, %246, %cst_85 [1] : vector<8x16xf32> to vector<8xf32>
    %263 = vector.shape_cast %262 : vector<8xf32> to vector<8x1xf32>
    %264 = vector.broadcast %263 : vector<8x1xf32> to vector<8x16xf32>
    %265 = arith.subf %246, %264 : vector<8x16xf32>
    %266 = math.exp %265 : vector<8x16xf32>
    %cst_86 = arith.constant dense<0.000000e+00> : vector<8xf32>
    %267 = vector.multi_reduction <add>, %266, %cst_86 [1] : vector<8x16xf32> to vector<8xf32>
    %268 = vector.shape_cast %267 : vector<8xf32> to vector<8x1xf32>
    %269 = math.log %268 : vector<8x1xf32>
    %270 = vector.broadcast %269 : vector<8x1xf32> to vector<8x16xf32>
    %271 = arith.subf %265, %270 : vector<8x16xf32>
    %272 = vector.broadcast %268 : vector<8x1xf32> to vector<8x16xf32>
    %273 = arith.divf %266, %272 : vector<8x16xf32>
    %274 = arith.mulf %273, %271 : vector<8x16xf32>
    %cst_87 = arith.constant dense<0.000000e+00> : vector<8xf32>
    %275 = vector.multi_reduction <add>, %274, %cst_87 [1] : vector<8x16xf32> to vector<8xf32>
    %276 = vector.shape_cast %275 : vector<8xf32> to vector<8x1xf32>
    %cst_88 = arith.constant 0.000000e+00 : f32
    %277 = vector.broadcast %cst_88 : f32 to vector<8x1xf32>
    %278 = arith.subf %277, %276 : vector<8x1xf32>
    %279 = arith.mulf %271, %261 : vector<8x16xf32>
    %cst_89 = arith.constant dense<0.000000e+00> : vector<8xf32>
    %280 = vector.multi_reduction <add>, %279, %cst_89 [1] : vector<8x16xf32> to vector<8xf32>
    %281 = vector.shape_cast %280 : vector<8xf32> to vector<8x1xf32>
    %c4_i32 = arith.constant 4 : i32
    %282 = vector.broadcast %c4_i32 : i32 to vector<8x9xi32>
    %283 = arith.cmpi eq, %26, %282 : vector<8x9xi32>
    %284 = vector.shape_cast %257 : vector<8x1xi32> to vector<8x1xi32>
    %285 = vector.broadcast %284 : vector<8x1xi32> to vector<8x9xi32>
    %286 = arith.select %283, %285, %233 : vector<8x9xi1>, vector<8x9xi32>
    %287 = vector.shape_cast %281 : vector<8x1xf32> to vector<8x1xf32>
    %288 = vector.broadcast %287 : vector<8x1xf32> to vector<8x9xf32>
    %289 = arith.select %283, %288, %236 : vector<8x9xi1>, vector<8x9xf32>
    %290 = vector.shape_cast %278 : vector<8x1xf32> to vector<8x1xf32>
    %291 = vector.broadcast %290 : vector<8x1xf32> to vector<8x9xf32>
    %292 = arith.select %283, %291, %239 : vector<8x9xi1>, vector<8x9xf32>
    %cst_90 = arith.constant dense<0.000000e+00> : vector<8x32xf32>
    %293 = tpu.matmul %261, %4, %cst_90 {dimension_numbers = #tpu.dot_dimension_numbers<[1], [0], [0], [1], [0, 0, 1, 1], [], []>} : vector<8x16xf32>, vector<16x32xf32>, vector<8x32xf32> -> vector<8x32xf32>
    %cst_91 = arith.constant dense<0.000000e+00> : vector<8x32xf32>
    %294 = tpu.matmul %244, %2, %cst_91 {dimension_numbers = #tpu.dot_dimension_numbers<[1], [0], [0], [1], [0, 0, 1, 1], [], []>} : vector<8x32xf32>, vector<32x32xf32>, vector<8x32xf32> -> vector<8x32xf32>
    %295 = arith.addf %293, %294 : vector<8x32xf32>
    %296 = arith.addf %295, %9 : vector<8x32xf32>
    %297 = math.tanh %296 : vector<8x32xf32>
    %cst_92 = arith.constant dense<0.000000e+00> : vector<8x16xf32>
    %298 = tpu.matmul %297, %15, %cst_92 {dimension_numbers = #tpu.dot_dimension_numbers<[1], [0], [0], [1], [0, 0, 1, 1], [], []>} : vector<8x32xf32>, vector<32x16xf32>, vector<8x16xf32> -> vector<8x16xf32>
    %299 = arith.addf %298, %18 : vector<8x16xf32>
    %c5 = arith.constant 5 : index
    %c0_93 = arith.constant 0 : index
    %c0_94 = arith.constant 0 : index
    %300 = vector.load %arg2[%c5, %c0_93, %c0_94] : memref<8x8x16xf32, #tpu.memory_space<vmem>>, vector<1x8x16xf32>
    %301 = vector.shape_cast %300 : vector<1x8x16xf32> to vector<8x16xf32>
    %302 = arith.addf %299, %301 : vector<8x16xf32>
    %cst_95 = arith.constant dense<0xFF800000> : vector<8xf32>
    %303 = vector.multi_reduction <maximumf>, %302, %cst_95 [1] : vector<8x16xf32> to vector<8xf32>
    %304 = vector.shape_cast %303 : vector<8xf32> to vector<8x1xf32>
    %305 = vector.broadcast %304 : vector<8x1xf32> to vector<8x16xf32>
    %306 = arith.cmpf oge, %302, %305 : vector<8x16xf32>
    %c16_i32_96 = arith.constant 16 : i32
    %307 = vector.broadcast %c16_i32_96 : i32 to vector<8x16xi32>
    %308 = arith.select %306, %25, %307 : vector<8x16xi1>, vector<8x16xi32>
    %cst_97 = arith.constant dense<2147483647> : vector<8xi32>
    %309 = vector.multi_reduction <minsi>, %308, %cst_97 [1] : vector<8x16xi32> to vector<8xi32>
    %310 = vector.shape_cast %309 : vector<8xi32> to vector<8x1xi32>
    %311 = vector.broadcast %310 : vector<8x1xi32> to vector<8x16xi32>
    %312 = arith.cmpi eq, %25, %311 : vector<8x16xi32>
    %313 = arith.extui %312 : vector<8x16xi1> to vector<8x16xi32>
    %314 = arith.sitofp %313 : vector<8x16xi32> to vector<8x16xf32>
    %cst_98 = arith.constant dense<0xFF800000> : vector<8xf32>
    %315 = vector.multi_reduction <maximumf>, %299, %cst_98 [1] : vector<8x16xf32> to vector<8xf32>
    %316 = vector.shape_cast %315 : vector<8xf32> to vector<8x1xf32>
    %317 = vector.broadcast %316 : vector<8x1xf32> to vector<8x16xf32>
    %318 = arith.subf %299, %317 : vector<8x16xf32>
    %319 = math.exp %318 : vector<8x16xf32>
    %cst_99 = arith.constant dense<0.000000e+00> : vector<8xf32>
    %320 = vector.multi_reduction <add>, %319, %cst_99 [1] : vector<8x16xf32> to vector<8xf32>
    %321 = vector.shape_cast %320 : vector<8xf32> to vector<8x1xf32>
    %322 = math.log %321 : vector<8x1xf32>
    %323 = vector.broadcast %322 : vector<8x1xf32> to vector<8x16xf32>
    %324 = arith.subf %318, %323 : vector<8x16xf32>
    %325 = vector.broadcast %321 : vector<8x1xf32> to vector<8x16xf32>
    %326 = arith.divf %319, %325 : vector<8x16xf32>
    %327 = arith.mulf %326, %324 : vector<8x16xf32>
    %cst_100 = arith.constant dense<0.000000e+00> : vector<8xf32>
    %328 = vector.multi_reduction <add>, %327, %cst_100 [1] : vector<8x16xf32> to vector<8xf32>
    %329 = vector.shape_cast %328 : vector<8xf32> to vector<8x1xf32>
    %cst_101 = arith.constant 0.000000e+00 : f32
    %330 = vector.broadcast %cst_101 : f32 to vector<8x1xf32>
    %331 = arith.subf %330, %329 : vector<8x1xf32>
    %332 = arith.mulf %324, %314 : vector<8x16xf32>
    %cst_102 = arith.constant dense<0.000000e+00> : vector<8xf32>
    %333 = vector.multi_reduction <add>, %332, %cst_102 [1] : vector<8x16xf32> to vector<8xf32>
    %334 = vector.shape_cast %333 : vector<8xf32> to vector<8x1xf32>
    %c5_i32 = arith.constant 5 : i32
    %335 = vector.broadcast %c5_i32 : i32 to vector<8x9xi32>
    %336 = arith.cmpi eq, %26, %335 : vector<8x9xi32>
    %337 = vector.shape_cast %310 : vector<8x1xi32> to vector<8x1xi32>
    %338 = vector.broadcast %337 : vector<8x1xi32> to vector<8x9xi32>
    %339 = arith.select %336, %338, %286 : vector<8x9xi1>, vector<8x9xi32>
    %340 = vector.shape_cast %334 : vector<8x1xf32> to vector<8x1xf32>
    %341 = vector.broadcast %340 : vector<8x1xf32> to vector<8x9xf32>
    %342 = arith.select %336, %341, %289 : vector<8x9xi1>, vector<8x9xf32>
    %343 = vector.shape_cast %331 : vector<8x1xf32> to vector<8x1xf32>
    %344 = vector.broadcast %343 : vector<8x1xf32> to vector<8x9xf32>
    %345 = arith.select %336, %344, %292 : vector<8x9xi1>, vector<8x9xf32>
    %cst_103 = arith.constant dense<0.000000e+00> : vector<8x32xf32>
    %346 = tpu.matmul %314, %4, %cst_103 {dimension_numbers = #tpu.dot_dimension_numbers<[1], [0], [0], [1], [0, 0, 1, 1], [], []>} : vector<8x16xf32>, vector<16x32xf32>, vector<8x32xf32> -> vector<8x32xf32>
    %cst_104 = arith.constant dense<0.000000e+00> : vector<8x32xf32>
    %347 = tpu.matmul %297, %2, %cst_104 {dimension_numbers = #tpu.dot_dimension_numbers<[1], [0], [0], [1], [0, 0, 1, 1], [], []>} : vector<8x32xf32>, vector<32x32xf32>, vector<8x32xf32> -> vector<8x32xf32>
    %348 = arith.addf %346, %347 : vector<8x32xf32>
    %349 = arith.addf %348, %9 : vector<8x32xf32>
    %350 = math.tanh %349 : vector<8x32xf32>
    %cst_105 = arith.constant dense<0.000000e+00> : vector<8x16xf32>
    %351 = tpu.matmul %350, %15, %cst_105 {dimension_numbers = #tpu.dot_dimension_numbers<[1], [0], [0], [1], [0, 0, 1, 1], [], []>} : vector<8x32xf32>, vector<32x16xf32>, vector<8x16xf32> -> vector<8x16xf32>
    %352 = arith.addf %351, %18 : vector<8x16xf32>
    %c6 = arith.constant 6 : index
    %c0_106 = arith.constant 0 : index
    %c0_107 = arith.constant 0 : index
    %353 = vector.load %arg2[%c6, %c0_106, %c0_107] : memref<8x8x16xf32, #tpu.memory_space<vmem>>, vector<1x8x16xf32>
    %354 = vector.shape_cast %353 : vector<1x8x16xf32> to vector<8x16xf32>
    %355 = arith.addf %352, %354 : vector<8x16xf32>
    %cst_108 = arith.constant dense<0xFF800000> : vector<8xf32>
    %356 = vector.multi_reduction <maximumf>, %355, %cst_108 [1] : vector<8x16xf32> to vector<8xf32>
    %357 = vector.shape_cast %356 : vector<8xf32> to vector<8x1xf32>
    %358 = vector.broadcast %357 : vector<8x1xf32> to vector<8x16xf32>
    %359 = arith.cmpf oge, %355, %358 : vector<8x16xf32>
    %c16_i32_109 = arith.constant 16 : i32
    %360 = vector.broadcast %c16_i32_109 : i32 to vector<8x16xi32>
    %361 = arith.select %359, %25, %360 : vector<8x16xi1>, vector<8x16xi32>
    %cst_110 = arith.constant dense<2147483647> : vector<8xi32>
    %362 = vector.multi_reduction <minsi>, %361, %cst_110 [1] : vector<8x16xi32> to vector<8xi32>
    %363 = vector.shape_cast %362 : vector<8xi32> to vector<8x1xi32>
    %364 = vector.broadcast %363 : vector<8x1xi32> to vector<8x16xi32>
    %365 = arith.cmpi eq, %25, %364 : vector<8x16xi32>
    %366 = arith.extui %365 : vector<8x16xi1> to vector<8x16xi32>
    %367 = arith.sitofp %366 : vector<8x16xi32> to vector<8x16xf32>
    %cst_111 = arith.constant dense<0xFF800000> : vector<8xf32>
    %368 = vector.multi_reduction <maximumf>, %352, %cst_111 [1] : vector<8x16xf32> to vector<8xf32>
    %369 = vector.shape_cast %368 : vector<8xf32> to vector<8x1xf32>
    %370 = vector.broadcast %369 : vector<8x1xf32> to vector<8x16xf32>
    %371 = arith.subf %352, %370 : vector<8x16xf32>
    %372 = math.exp %371 : vector<8x16xf32>
    %cst_112 = arith.constant dense<0.000000e+00> : vector<8xf32>
    %373 = vector.multi_reduction <add>, %372, %cst_112 [1] : vector<8x16xf32> to vector<8xf32>
    %374 = vector.shape_cast %373 : vector<8xf32> to vector<8x1xf32>
    %375 = math.log %374 : vector<8x1xf32>
    %376 = vector.broadcast %375 : vector<8x1xf32> to vector<8x16xf32>
    %377 = arith.subf %371, %376 : vector<8x16xf32>
    %378 = vector.broadcast %374 : vector<8x1xf32> to vector<8x16xf32>
    %379 = arith.divf %372, %378 : vector<8x16xf32>
    %380 = arith.mulf %379, %377 : vector<8x16xf32>
    %cst_113 = arith.constant dense<0.000000e+00> : vector<8xf32>
    %381 = vector.multi_reduction <add>, %380, %cst_113 [1] : vector<8x16xf32> to vector<8xf32>
    %382 = vector.shape_cast %381 : vector<8xf32> to vector<8x1xf32>
    %cst_114 = arith.constant 0.000000e+00 : f32
    %383 = vector.broadcast %cst_114 : f32 to vector<8x1xf32>
    %384 = arith.subf %383, %382 : vector<8x1xf32>
    %385 = arith.mulf %377, %367 : vector<8x16xf32>
    %cst_115 = arith.constant dense<0.000000e+00> : vector<8xf32>
    %386 = vector.multi_reduction <add>, %385, %cst_115 [1] : vector<8x16xf32> to vector<8xf32>
    %387 = vector.shape_cast %386 : vector<8xf32> to vector<8x1xf32>
    %c6_i32 = arith.constant 6 : i32
    %388 = vector.broadcast %c6_i32 : i32 to vector<8x9xi32>
    %389 = arith.cmpi eq, %26, %388 : vector<8x9xi32>
    %390 = vector.shape_cast %363 : vector<8x1xi32> to vector<8x1xi32>
    %391 = vector.broadcast %390 : vector<8x1xi32> to vector<8x9xi32>
    %392 = arith.select %389, %391, %339 : vector<8x9xi1>, vector<8x9xi32>
    %393 = vector.shape_cast %387 : vector<8x1xf32> to vector<8x1xf32>
    %394 = vector.broadcast %393 : vector<8x1xf32> to vector<8x9xf32>
    %395 = arith.select %389, %394, %342 : vector<8x9xi1>, vector<8x9xf32>
    %396 = vector.shape_cast %384 : vector<8x1xf32> to vector<8x1xf32>
    %397 = vector.broadcast %396 : vector<8x1xf32> to vector<8x9xf32>
    %398 = arith.select %389, %397, %345 : vector<8x9xi1>, vector<8x9xf32>
    %cst_116 = arith.constant dense<0.000000e+00> : vector<8x32xf32>
    %399 = tpu.matmul %367, %4, %cst_116 {dimension_numbers = #tpu.dot_dimension_numbers<[1], [0], [0], [1], [0, 0, 1, 1], [], []>} : vector<8x16xf32>, vector<16x32xf32>, vector<8x32xf32> -> vector<8x32xf32>
    %cst_117 = arith.constant dense<0.000000e+00> : vector<8x32xf32>
    %400 = tpu.matmul %350, %2, %cst_117 {dimension_numbers = #tpu.dot_dimension_numbers<[1], [0], [0], [1], [0, 0, 1, 1], [], []>} : vector<8x32xf32>, vector<32x32xf32>, vector<8x32xf32> -> vector<8x32xf32>
    %401 = arith.addf %399, %400 : vector<8x32xf32>
    %402 = arith.addf %401, %9 : vector<8x32xf32>
    %403 = math.tanh %402 : vector<8x32xf32>
    %cst_118 = arith.constant dense<0.000000e+00> : vector<8x16xf32>
    %404 = tpu.matmul %403, %15, %cst_118 {dimension_numbers = #tpu.dot_dimension_numbers<[1], [0], [0], [1], [0, 0, 1, 1], [], []>} : vector<8x32xf32>, vector<32x16xf32>, vector<8x16xf32> -> vector<8x16xf32>
    %405 = arith.addf %404, %18 : vector<8x16xf32>
    %c7 = arith.constant 7 : index
    %c0_119 = arith.constant 0 : index
    %c0_120 = arith.constant 0 : index
    %406 = vector.load %arg2[%c7, %c0_119, %c0_120] : memref<8x8x16xf32, #tpu.memory_space<vmem>>, vector<1x8x16xf32>
    %407 = vector.shape_cast %406 : vector<1x8x16xf32> to vector<8x16xf32>
    %408 = arith.addf %405, %407 : vector<8x16xf32>
    %cst_121 = arith.constant dense<0xFF800000> : vector<8xf32>
    %409 = vector.multi_reduction <maximumf>, %408, %cst_121 [1] : vector<8x16xf32> to vector<8xf32>
    %410 = vector.shape_cast %409 : vector<8xf32> to vector<8x1xf32>
    %411 = vector.broadcast %410 : vector<8x1xf32> to vector<8x16xf32>
    %412 = arith.cmpf oge, %408, %411 : vector<8x16xf32>
    %c16_i32_122 = arith.constant 16 : i32
    %413 = vector.broadcast %c16_i32_122 : i32 to vector<8x16xi32>
    %414 = arith.select %412, %25, %413 : vector<8x16xi1>, vector<8x16xi32>
    %cst_123 = arith.constant dense<2147483647> : vector<8xi32>
    %415 = vector.multi_reduction <minsi>, %414, %cst_123 [1] : vector<8x16xi32> to vector<8xi32>
    %416 = vector.shape_cast %415 : vector<8xi32> to vector<8x1xi32>
    %417 = vector.broadcast %416 : vector<8x1xi32> to vector<8x16xi32>
    %418 = arith.cmpi eq, %25, %417 : vector<8x16xi32>
    %419 = arith.extui %418 : vector<8x16xi1> to vector<8x16xi32>
    %420 = arith.sitofp %419 : vector<8x16xi32> to vector<8x16xf32>
    %cst_124 = arith.constant dense<0xFF800000> : vector<8xf32>
    %421 = vector.multi_reduction <maximumf>, %405, %cst_124 [1] : vector<8x16xf32> to vector<8xf32>
    %422 = vector.shape_cast %421 : vector<8xf32> to vector<8x1xf32>
    %423 = vector.broadcast %422 : vector<8x1xf32> to vector<8x16xf32>
    %424 = arith.subf %405, %423 : vector<8x16xf32>
    %425 = math.exp %424 : vector<8x16xf32>
    %cst_125 = arith.constant dense<0.000000e+00> : vector<8xf32>
    %426 = vector.multi_reduction <add>, %425, %cst_125 [1] : vector<8x16xf32> to vector<8xf32>
    %427 = vector.shape_cast %426 : vector<8xf32> to vector<8x1xf32>
    %428 = math.log %427 : vector<8x1xf32>
    %429 = vector.broadcast %428 : vector<8x1xf32> to vector<8x16xf32>
    %430 = arith.subf %424, %429 : vector<8x16xf32>
    %431 = vector.broadcast %427 : vector<8x1xf32> to vector<8x16xf32>
    %432 = arith.divf %425, %431 : vector<8x16xf32>
    %433 = arith.mulf %432, %430 : vector<8x16xf32>
    %cst_126 = arith.constant dense<0.000000e+00> : vector<8xf32>
    %434 = vector.multi_reduction <add>, %433, %cst_126 [1] : vector<8x16xf32> to vector<8xf32>
    %435 = vector.shape_cast %434 : vector<8xf32> to vector<8x1xf32>
    %cst_127 = arith.constant 0.000000e+00 : f32
    %436 = vector.broadcast %cst_127 : f32 to vector<8x1xf32>
    %437 = arith.subf %436, %435 : vector<8x1xf32>
    %438 = arith.mulf %430, %420 : vector<8x16xf32>
    %cst_128 = arith.constant dense<0.000000e+00> : vector<8xf32>
    %439 = vector.multi_reduction <add>, %438, %cst_128 [1] : vector<8x16xf32> to vector<8xf32>
    %440 = vector.shape_cast %439 : vector<8xf32> to vector<8x1xf32>
    %c7_i32 = arith.constant 7 : i32
    %441 = vector.broadcast %c7_i32 : i32 to vector<8x9xi32>
    %442 = arith.cmpi eq, %26, %441 : vector<8x9xi32>
    %443 = vector.shape_cast %416 : vector<8x1xi32> to vector<8x1xi32>
    %444 = vector.broadcast %443 : vector<8x1xi32> to vector<8x9xi32>
    %445 = arith.select %442, %444, %392 : vector<8x9xi1>, vector<8x9xi32>
    %446 = vector.shape_cast %440 : vector<8x1xf32> to vector<8x1xf32>
    %447 = vector.broadcast %446 : vector<8x1xf32> to vector<8x9xf32>
    %448 = arith.select %442, %447, %395 : vector<8x9xi1>, vector<8x9xf32>
    %449 = vector.shape_cast %437 : vector<8x1xf32> to vector<8x1xf32>
    %450 = vector.broadcast %449 : vector<8x1xf32> to vector<8x9xf32>
    %451 = arith.select %442, %450, %398 : vector<8x9xi1>, vector<8x9xf32>
    %c0_129 = arith.constant 0 : index
    %c0_130 = arith.constant 0 : index
    %452 = vector.load %arg13[%c0_129, %c0_130] : memref<8x9xi32, #tpu.memory_space<vmem>>, vector<8x9xi32>
    tpu.vector_store %arg13[%c0_129, %c0_130], %445 {strides = array<i32>} : memref<8x9xi32, #tpu.memory_space<vmem>>, vector<8x9xi32>,
    %c0_131 = arith.constant 0 : index
    %c0_132 = arith.constant 0 : index
    %453 = vector.load %arg14[%c0_131, %c0_132] : memref<8x9xf32, #tpu.memory_space<vmem>>, vector<8x9xf32>
    tpu.vector_store %arg14[%c0_131, %c0_132], %448 {strides = array<i32>} : memref<8x9xf32, #tpu.memory_space<vmem>>, vector<8x9xf32>,
    %c0_133 = arith.constant 0 : index
    %c0_134 = arith.constant 0 : index
    %454 = vector.load %arg15[%c0_133, %c0_134] : memref<8x9xf32, #tpu.memory_space<vmem>>, vector<8x9xf32>
    tpu.vector_store %arg15[%c0_133, %c0_134], %451 {strides = array<i32>} : memref<8x9xf32, #tpu.memory_space<vmem>>, vector<8x9xf32>,
    return
  }
  func.func @transform_0(%arg0: i32) -> (i32, i32) {
    %c0_i32 = arith.constant 0 : i32
    %c0_i32_0 = arith.constant 0 : i32
    return %arg0, %c0_i32 : i32, i32
  }
  func.func @transform_1(%arg0: i32) -> (i32, i32, i32) {
    %c0_i32 = arith.constant 0 : i32
    %c0_i32_0 = arith.constant 0 : i32
    %c0_i32_1 = arith.constant 0 : i32
    return %c0_i32, %arg0, %c0_i32_0 : i32, i32, i32
  }
  func.func @transform_2(%arg0: i32) -> (i32, i32) {
    %c0_i32 = arith.constant 0 : i32
    %c0_i32_0 = arith.constant 0 : i32
    %c0_i32_1 = arith.constant 0 : i32
    return %c0_i32, %c0_i32_0 : i32, i32
  }
  func.func @transform_3(%arg0: i32) -> (i32, i32) {
    %c0_i32 = arith.constant 0 : i32
    %c0_i32_0 = arith.constant 0 : i32
    %c0_i32_1 = arith.constant 0 : i32
    return %c0_i32, %c0_i32_0 : i32, i32
  }
  func.func @transform_4(%arg0: i32) -> (i32, i32) {
    %c0_i32 = arith.constant 0 : i32
    %c0_i32_0 = arith.constant 0 : i32
    %c0_i32_1 = arith.constant 0 : i32
    return %c0_i32, %c0_i32_0 : i32, i32
  }
  func.func @transform_5(%arg0: i32) -> (i32, i32) {
    %c0_i32 = arith.constant 0 : i32
    %c0_i32_0 = arith.constant 0 : i32
    %c0_i32_1 = arith.constant 0 : i32
    return %c0_i32, %c0_i32_0 : i32, i32
  }
  func.func @transform_6(%arg0: i32) -> (i32, i32) {
    %c0_i32 = arith.constant 0 : i32
    %c0_i32_0 = arith.constant 0 : i32
    %c0_i32_1 = arith.constant 0 : i32
    return %c0_i32, %c0_i32_0 : i32, i32
  }
  func.func @transform_7(%arg0: i32) -> (i32, i32) {
    %c0_i32 = arith.constant 0 : i32
    %c0_i32_0 = arith.constant 0 : i32
    %c0_i32_1 = arith.constant 0 : i32
    return %c0_i32, %c0_i32_0 : i32, i32
  }
  func.func @transform_8(%arg0: i32) -> (i32, i32) {
    %c0_i32 = arith.constant 0 : i32
    %c0_i32_0 = arith.constant 0 : i32
    %c0_i32_1 = arith.constant 0 : i32
    return %c0_i32, %c0_i32_0 : i32, i32
  }
  func.func @transform_9(%arg0: i32) -> (i32, i32) {
    %c0_i32 = arith.constant 0 : i32
    %c0_i32_0 = arith.constant 0 : i32
    %c0_i32_1 = arith.constant 0 : i32
    return %c0_i32, %c0_i32_0 : i32, i32
  }
  func.func @transform_10(%arg0: i32) -> (i32, i32) {
    %c0_i32 = arith.constant 0 : i32
    %c0_i32_0 = arith.constant 0 : i32
    %c0_i32_1 = arith.constant 0 : i32
    return %c0_i32, %c0_i32_0 : i32, i32
  }
  func.func @transform_11(%arg0: i32) -> (i32, i32) {
    %c0_i32 = arith.constant 0 : i32
    %c0_i32_0 = arith.constant 0 : i32
    %c0_i32_1 = arith.constant 0 : i32
    return %c0_i32, %c0_i32_0 : i32, i32
  }
  func.func @transform_12(%arg0: i32) -> (i32, i32) {
    %c0_i32 = arith.constant 0 : i32
    %c0_i32_0 = arith.constant 0 : i32
    return %arg0, %c0_i32 : i32, i32
  }
  func.func @transform_13(%arg0: i32) -> (i32, i32) {
    %c0_i32 = arith.constant 0 : i32
    %c0_i32_0 = arith.constant 0 : i32
    return %arg0, %c0_i32 : i32, i32
  }
  func.func @transform_14(%arg0: i32) -> (i32, i32) {
    %c0_i32 = arith.constant 0 : i32
    %c0_i32_0 = arith.constant 0 : i32
    return %arg0, %c0_i32 : i32, i32
  }
}

</mosaic_0001>

<bundles_post_ra>
// kernel: rnn_sender_forward.1
= control target key start
LH: loop header
LB: loop body
LE: loop exit
PB: predicated region body
PF: predicated region fallthrough
CT: control target
= control target key end

     0   :  { %20 = vsyncpa [#allocation3], 0  ;;  %vm55_vm0 = vcmask 130048   ;;  %s2086_s0 = inlined_call_operand.vmem [shape: f32[8,16], index: 0, kind: input, shape index: {}]   ;;  %s2087_s1 = inlined_call_operand.vmem [shape: f32[8,8,16], index: 1, kind: input, shape index: {}]   ;;  %s2088_s2 = inlined_call_operand.vmem [shape: f32[16,32], index: 2, kind: input, shape index: {}]   ;;  %s2089_s3 = inlined_call_operand.vmem [shape: f32[1,32], index: 3, kind: input, shape index: {}]   ;;  %s2090_s4 = inlined_call_operand.vmem [shape: f32[16,32], index: 4, kind: input, shape index: {}]   ;;  %s2091_s5 = inlined_call_operand.vmem [shape: f32[1,32], index: 5, kind: input, shape index: {}]   ;;  %s2092_s6 = inlined_call_operand.vmem [shape: f32[32,32], index: 6, kind: input, shape index: {}]   ;;  %s2093_s7 = inlined_call_operand.vmem [shape: f32[1,32], index: 7, kind: input, shape index: {}]   ;;  %s2094_s8 = inlined_call_operand.vmem [shape: f32[32,16], index: 8, kind: input, shape index: {}]   ;;  %s2095_s9 = inlined_call_operand.vmem [shape: f32[1,16], index: 9, kind: input, shape index: {}]   ;;  %s2096_s10 = inlined_call_operand.vmem [shape: f32[16,16], index: 10, kind: input, shape index: {}]   ;;  %s2097_s11 = inlined_call_operand.vmem [shape: f32[1,16], index: 11, kind: input, shape index: {}]   ;;  %s2098_s12 = inlined_call_operand.hbm [shape: s32[8,9], index: 12, kind: output, shape index: {0}]   ;;  %s2099_s13 = inlined_call_operand.hbm [shape: f32[8,9], index: 13, kind: output, shape index: {1}]   ;;  %s2100_s14 = inlined_call_operand.hbm [shape: f32[8,9], index: 14, kind: output, shape index: {2}]  }
   0x1   :  { %v126_v0 = vld [vmem:[%s2088_s2 + $0x8] sm:$0xff]  ;;  %v125_v1 = vld [vmem:[%s2088_s2] sm:$0xff]  ;;  %v1537_v3 = vld [vmem:[%s2092_s6 + $0x18] sm:$0xff] }
   0x2   :  { %v46_v2 = vld [vmem:[%s2086_s0] sm:$0xff]  ;;  %148 = vmatpush.msra.mxu2 %v126_v0  ;;  %v1542_v4 = vld [vmem:[%s2092_s6 + $0x10] sm:$0xff]  ;;  %172 = vmatpush.msra.mxu3 %v1537_v3 }
   0x3   :  { %21 = vsyncpa [#allocation5], 0  ;;  %v1552_v5 = vld [vmem:[%s2092_s6 + $0x8] sm:$0xff]  ;;  %v1562_v7 = vld [vmem:[%s2092_s6] sm:$0xff]  ;;  %vm156_vm1 = vcmask 261120   ;;  %v154_v35 = vlaneseq  ;;  %v1446_v53 = vmov 0.0  }
   0x4   :  { %149 = vmatpush.msra.mxu2 %v125_v1  ;;  %173 = vmatpush.msra.mxu3 %v1542_v4  ;;  %v48_v6 = vld [vmem:[%s2090_s4 + $0x8] sm:$0xff]  ;;  %v47_v8 = vld [vmem:[%s2090_s4] sm:$0xff]  ;;  %v1580_v13 = vld [vmem:[%s2094_s8 + $0x18] sm:$0xff]  ;;  %s1449_s23 = smov [#allocation6]   ;;  %s1240_s26 = sshll.u32 %s2100_s14, 4  ;;  %s1241_s26 = int_to_ptr.hbm [resolvable:$true] %s1240_s26 }
   0x5   :  { %1261 = vmatmul.msk.f32.vlgmr.msra.gmra.mxu2 %vm55_vm0, %v46_v2  ;;  %109 = vmatpush.msra.mxu1 %v48_v6  ;;  %v91_v9 = vld [vmem:[%s2097_s11] sm:$0x1]  ;;  %v1586_v14 = vld [vmem:[%s2094_s8 + $0x10] sm:$0xff]  ;;  %v1592_v15 = vld [vmem:[%s2094_s8 + $0x8] sm:$0xff]  ;;  %v1645_v36 = vand.u32 127, %v154_v35  ;;  %s1238_s24 = sshll.u32 %s1449_s23, 4  ;;  %s1239_s24 = int_to_ptr.vmem [resolvable:$true] %s1238_s24 }
   0x6   :  { %281 = vmatpush.msrb.mxu2 %v1537_v3  ;;  %174 = vmatpush.msra.mxu3 %v1552_v5  ;;  %v1304_v10 = vld [vmem:[%s2089_s3] ss:$0 sm:$0xff]  ;;  %v54_v34 = vld [vmem:[%s2096_s10 + $0x8] sm:$0xff]  ;;  %v1273_v35 = vld [vmem:[%s2087_s1 + $0x10] sm:$0xff] }
   0x7   :  { %76 = vmatpush.msra.mxu0 %v48_v6  ;;  %110 = vmatpush.msra.mxu1 %v47_v8  ;;  %v1599_v16 = vld [vmem:[%s2094_s8] sm:$0xff]  ;;  %v1268_v61 = vld [vmem:[%s2087_s1 + $0x8] sm:$0xff]  ;;  %vm265_vm7 = vcmp.eq.s32.totalorder %v1645_v36, 0  ;;  %vm399_vm8 = vcmp.eq.s32.totalorder %v1645_v36, 1  ;;  %vm533_vm12 = vcmp.eq.s32.totalorder %v1645_v36, 2  ;;  %s1218_s8 = sshll.u32 %s2098_s12, 4  ;;  %s1219_s8 = int_to_ptr.hbm [resolvable:$true] %s1218_s8 }
   0x8   :  { %282 = vmatpush.msrb.mxu2 %v1542_v4  ;;  %175 = vmatpush.msra.mxu3 %v1562_v7  ;;  %v85_v17 = vld [vmem:[%s2091_s5] sm:$0x1]  ;;  %s1448_s12 = smov [#allocation4]  }
   0x9   :  { %1260 = vmatmul.msk.f32.vlgmr.msra.gmra.mxu1 %vm55_vm0, %v91_v9  ;;  %77 = vmatpush.msra.mxu0 %v47_v8  ;;  %v86_v18 = vld [vmem:[%s2093_s7] sm:$0x1]  ;;  %s1227_s0 = sshll.u32 %s1448_s12, 4  ;;  %s1229_s7 = sshll.u32 %s2099_s13, 4  ;;  %s1228_s0 = int_to_ptr.vmem [resolvable:$true] %s1227_s0  ;;  %s1230_s7 = int_to_ptr.hbm [resolvable:$true] %s1229_s7 }
   0xa   :  { %283 = vmatpush.msrb.mxu2 %v1552_v5  ;;  %196 = vmatpush.msrb.mxu1 %v1580_v13  ;;  %v87_v19 = vadd.f32 %v86_v18, %v85_v17  ;;  %v1623_v27 = vld [vmem:[%s2095_s9] ss:$0 sm:$0xff] }
   0xb   :  { %329 = vmatpush.msrb.mxu0 %v1580_v13  ;;  %v204_v29 = vld [vmem:[%s2087_s1] sm:$0xff] }
   0xc   :  { %284 = vmatpush.msrb.mxu2 %v1562_v7  ;;  %197 = vmatpush.msrb.mxu1 %v1586_v14  ;;  %v1615_v22 = vperm.slane %v87_v19, 0  ;;  %v53_v33 = vld [vmem:[%s2096_s10] sm:$0xff] }
   0xd   :  { %330 = vmatpush.msrb.mxu0 %v1586_v14 }
   0xe   :  { %198 = vmatpush.msrb.mxu1 %v1592_v15  ;;  %1258 = vmatmul.msk.f32.vlgmr.msra.gmra.mxu0 %vm55_vm0, %v53_v33 }
   0xf   :  { %331 = vmatpush.msrb.mxu0 %v1592_v15 }
  0x10   :  { %199 = vmatpush.msrb.mxu1 %v1599_v16 }
  0x11   :  { %332 = vmatpush.msrb.mxu0 %v1599_v16 }
  0x12   :  { %415 = vmatpush.msra.mxu1 %v1537_v3 }
  0x13   :  { %549 = vmatpush.msra.mxu0 %v1537_v3 }
  0x14   :  { %416 = vmatpush.msra.mxu1 %v1542_v4 }
  0x15   :  { %550 = vmatpush.msra.mxu0 %v1542_v4 }
  0x16   :  { %417 = vmatpush.msra.mxu1 %v1552_v5  ;;  %1259 = vmatmul.msk.f32.gmra.mxu0 %vm55_vm0, %v54_v34 }
  0x17   :  { %551 = vmatpush.msra.mxu0 %v1552_v5 }
  0x18   :  { %418 = vmatpush.msra.mxu1 %v1562_v7 }
  0x19   :  { %552 = vmatpush.msra.mxu0 %v1562_v7 }
  0x86   :  { %v112_v20 = vpop.f32.mrf.mxu1 }
  0x87   :  { %v115_v21 = vperm.slane %v112_v20, 0 }
  0x88   :  { %v151_v11 = vpop.f32.mrf.mxu2 }
  0x89   :  { %v152_v12 = vadd.f32 %v1304_v10, %v151_v11  ;;  %v116_v23 = vadd.f32 %v115_v21, %v1615_v22 }
  0x8b   :  { %1262 = vmatmul.msk.f32.vlgmr.msra.gmra.mxu3 %vm156_vm1, %v152_v12  ;;  %v1649_v42 = vpop.f32.mrf.mxu0 }
  0x93   :  { %v1651_v43 = vpop.f32.mrf.mxu0 }
  0x94   :  { %306 = vmatpush.msrb.mxu3 %v1651_v43  ;;  %440 = vmatpush.msra.mxu2 %v1651_v43 }
  0x96   :  { %307 = vmatpush.msrb.mxu3 %v1649_v42  ;;  %441 = vmatpush.msra.mxu2 %v1649_v42 }
  0x98   :  { %463 = vmatpush.msra.mxu3 %v1580_v13 }
  0x9a   :  { %464 = vmatpush.msra.mxu3 %v1586_v14 }
  0x9c   :  { %465 = vmatpush.msra.mxu3 %v1592_v15 }
  0x9e   :  { %466 = vmatpush.msra.mxu3 %v1599_v16 }
 0x10e   :  { %v177_v24 = vpop.f32.mrf.mxu3 }
 0x10f   :  { %v178_v25 = vadd.f32 %v177_v24, %v116_v23 }
 0x111   :  { %1306 = vtanh.f32 %v178_v25 }
 0x117   :  { %v1307_v26 = vpop.eup %1306 }
 0x118   :  { %1263 = vmatmul.msk.f32.vlgmr.msrb.gmra.mxu1 %vm156_vm1, %v1307_v26  ;;  %1265 = vmatmul.msk.f32.vlgmr.msrb.gmra.mxu2 %vm156_vm1, %v1307_v26 }
 0x119   :  { %574 = vmatpush.msrb.mxu1 %v1651_v43  ;;  %597 = vmatpush.msrb.mxu2 %v1580_v13 }
 0x11b   :  { %575 = vmatpush.msrb.mxu1 %v1649_v42  ;;  %598 = vmatpush.msrb.mxu2 %v1586_v14 }
 0x11d   :  { %599 = vmatpush.msrb.mxu2 %v1592_v15 }
 0x11f   :  { %600 = vmatpush.msrb.mxu2 %v1599_v16 }
 0x195   :  { %v201_v28 = vpop.f32.mrf.mxu1 }
 0x196   :  { %v1629_v30 = vadd.f32 %v1623_v27, %v201_v28 }
 0x198   :  { %v205_v31 = vadd.f32 %v204_v29, %v1629_v30 }
 0x19a   :  { %v206_v32 = vsel %vm55_vm0, %v205_v31, -inf }
 0x19b   :  { %207 = vmax.xlane.f32.xlu0 %v206_v32  ;;  %v286_v55 = vpop.f32.mrf.mxu2 }
 0x20e   :  { %v208_v37 = vpop.xlane.xlu0 %207 }
 0x20f   :  { %vm209_vm2 = vcmp.ge.f32.partialorder %v205_v31, %v208_v37 }
 0x210   :  { %v210_v38 = vsel %vm209_vm2, %v1645_v36, 16  ;;  %vm667_vm2 = vcmp.eq.s32.totalorder %v1645_v36, 3 }
 0x211   :  { %v211_v39 = vsel %vm55_vm0, %v210_v38, 2147483647 }
 0x212   :  { %v213_v40 = vshra.s32 %v211_v39, 16  ;;  %v212_v44 = vand.u32 65535, %v211_v39 }
 0x214   :  { %v215_v41 = vcvt.s32.f32 %v213_v40  ;;  %v214_v46 = vcvt.s32.f32 %v212_v44 }
 0x216   :  { %216 = vmin.xlane.f32.xlu0 %v215_v41 }
 0x289   :  { %v217_v45 = vpop.xlane.xlu0 %216 }
 0x28a   :  { %vm218_vm3 = vcmp.eq.f32.partialorder %v215_v41, %v217_v45  ;;  %v223_v48 = vcvt.f32.s32 %v217_v45 }
 0x28b   :  { %v219_v47 = vsel %vm218_vm3, %v214_v46, inf }
 0x28c   :  { %220 = vmin.xlane.f32.xlu1 %v219_v47  ;;  %v224_v50 = vshll.u32 %v223_v48, 16 }
 0x2ff   :  { %v221_v49 = vpop.xlane.xlu1 %220 }
 0x300   :  { %v222_v51 = vcvt.f32.s32 %v221_v49 }
 0x302   :  { %v225_v52 = vadd.s32 %v224_v50, %v222_v51 }
 0x304   :  { %vm226_vm4 = vcmp.eq.s32.totalorder %v1645_v36, %v225_v52  ;;  %v266_v24 = vsel %vm265_vm7, %v225_v52, 0 }
 0x305   :  { %v1669_v54 = vsel %vm226_vm4, 1.0, %v1446_v53 }
 0x306   :  { %1266 = vmatmul.msk.f32.vlgmr.msrb.gmra.mxu3 %vm55_vm0, %v1669_v54 }
 0x307   :  { %683 = vmatpush.msrb.mxu3 %v1537_v3 }
 0x309   :  { %684 = vmatpush.msrb.mxu3 %v1542_v4 }
 0x30b   :  { %685 = vmatpush.msrb.mxu3 %v1552_v5 }
 0x30d   :  { %686 = vmatpush.msrb.mxu3 %v1562_v7 }
 0x389   :  { %v309_v56 = vpop.f32.mrf.mxu3 }
 0x38a   :  { %v310_v57 = vadd.f32 %v309_v56, %v286_v55 }
 0x38c   :  { %v312_v58 = vadd.f32 %v310_v57, %v1615_v22 }
 0x38e   :  { %1308 = vtanh.f32 %v312_v58 }
 0x394   :  { %v1309_v59 = vpop.eup %1308 }
 0x395   :  { %1267 = vmatmul.msk.f32.vlgmr.msrb.gmra.mxu0 %vm156_vm1, %v1309_v59  ;;  %1270 = vmatmul.msk.f32.vlgmr.msra.gmra.mxu1 %vm156_vm1, %v1309_v59 }
 0x396   :  { %708 = vmatpush.msrb.mxu0 %v1651_v43  ;;  %731 = vmatpush.msra.mxu1 %v1580_v13 }
 0x398   :  { %709 = vmatpush.msrb.mxu0 %v1649_v42  ;;  %732 = vmatpush.msra.mxu1 %v1586_v14 }
 0x39a   :  { %733 = vmatpush.msra.mxu1 %v1592_v15 }
 0x39c   :  { %734 = vmatpush.msra.mxu1 %v1599_v16 }
 0x412   :  { %v334_v60 = vpop.f32.mrf.mxu0  ;;  %v420_v28 = vpop.f32.mrf.mxu1 }
 0x413   :  { %v1690_v62 = vadd.f32 %v1623_v27, %v334_v60 }
 0x415   :  { %v339_v63 = vadd.f32 %v1268_v61, %v1690_v62 }
 0x417   :  { %v340_v0 = vsel %vm55_vm0, %v339_v63, -inf }
 0x418   :  { %341 = vmax.xlane.f32.xlu1 %v340_v0 }
 0x48b   :  { %v342_v1 = vpop.xlane.xlu1 %341 }
 0x48c   :  { %vm343_vm5 = vcmp.ge.f32.partialorder %v339_v63, %v342_v1 }
 0x48d   :  { %v344_v2 = vsel %vm343_vm5, %v1645_v36, 16 }
 0x48e   :  { %v345_v6 = vsel %vm55_vm0, %v344_v2, 2147483647 }
 0x48f   :  { %v347_v8 = vshra.s32 %v345_v6, 16  ;;  %v346_v10 = vand.u32 65535, %v345_v6  ;;  %v1278_v6 = vld [vmem:[%s2087_s1 + $0x18] sm:$0xff] }
 0x491   :  { %v349_v9 = vcvt.s32.f32 %v347_v8  ;;  %v348_v12 = vcvt.s32.f32 %v346_v10 }
 0x493   :  { %350 = vmin.xlane.f32.xlu2 %v349_v9 }
 0x506   :  { %v351_v11 = vpop.xlane.xlu2 %350 }
 0x507   :  { %vm352_vm6 = vcmp.eq.f32.partialorder %v349_v9, %v351_v11  ;;  %v357_v18 = vcvt.f32.s32 %v351_v11 }
 0x508   :  { %v353_v17 = vsel %vm352_vm6, %v348_v12, inf  ;;  %vm801_vm6 = vcmp.eq.s32.totalorder %v1645_v36, 4 }
 0x509   :  { %354 = vmin.xlane.f32.xlu2 %v353_v17  ;;  %v358_v20 = vshll.u32 %v357_v18, 16 }
 0x57c   :  { %v355_v19 = vpop.xlane.xlu2 %354 }
 0x57d   :  { %v356_v21 = vcvt.f32.s32 %v355_v19 }
 0x57f   :  { %v359_v23 = vadd.s32 %v358_v20, %v356_v21 }
 0x581   :  { %vm360_vm9 = vcmp.eq.s32.totalorder %v1645_v36, %v359_v23  ;;  %v400_v25 = vsel %vm399_vm8, %v359_v23, %v266_v24 }
 0x582   :  { %v1704_v26 = vsel %vm360_vm9, 1.0, %v1446_v53 }
 0x583   :  { %1271 = vmatmul.msk.f32.vlgmr.msra.gmra.mxu2 %vm55_vm0, %v1704_v26 }
 0x584   :  { %817 = vmatpush.msra.mxu2 %v1537_v3 }
 0x586   :  { %818 = vmatpush.msra.mxu2 %v1542_v4 }
 0x588   :  { %819 = vmatpush.msra.mxu2 %v1552_v5 }
 0x58a   :  { %820 = vmatpush.msra.mxu2 %v1562_v7 }
 0x606   :  { %v443_v29 = vpop.f32.mrf.mxu2 }
 0x607   :  { %v444_v31 = vadd.f32 %v443_v29, %v420_v28 }
 0x609   :  { %v446_v32 = vadd.f32 %v444_v31, %v1615_v22 }
 0x60b   :  { %1310 = vtanh.f32 %v446_v32 }
 0x611   :  { %v1311_v33 = vpop.eup %1310 }
 0x612   :  { %1272 = vmatmul.msk.f32.vlgmr.msra.gmra.mxu3 %vm156_vm1, %v1311_v33  ;;  %1275 = vmatmul.msk.f32.vlgmr.msra.gmra.mxu0 %vm156_vm1, %v1311_v33 }
 0x613   :  { %842 = vmatpush.msra.mxu3 %v1651_v43  ;;  %865 = vmatpush.msra.mxu0 %v1580_v13 }
 0x615   :  { %843 = vmatpush.msra.mxu3 %v1649_v42  ;;  %866 = vmatpush.msra.mxu0 %v1586_v14 }
 0x617   :  { %867 = vmatpush.msra.mxu0 %v1592_v15 }
 0x619   :  { %868 = vmatpush.msra.mxu0 %v1599_v16 }
 0x68f   :  { %v554_v60 = vpop.f32.mrf.mxu0 }
 0x695   :  { %v468_v34 = vpop.f32.mrf.mxu3 }
 0x696   :  { %v1725_v37 = vadd.f32 %v1623_v27, %v468_v34 }
 0x698   :  { %v473_v38 = vadd.f32 %v1273_v35, %v1725_v37 }
 0x69a   :  { %v474_v39 = vsel %vm55_vm0, %v473_v38, -inf }
 0x69b   :  { %475 = vmax.xlane.f32.xlu0 %v474_v39 }
 0x70e   :  { %v476_v40 = vpop.xlane.xlu0 %475 }
 0x70f   :  { %vm477_vm10 = vcmp.ge.f32.partialorder %v473_v38, %v476_v40 }
 0x710   :  { %v478_v41 = vsel %vm477_vm10, %v1645_v36, 16 }
 0x711   :  { %v479_v44 = vsel %vm55_vm0, %v478_v41, 2147483647 }
 0x712   :  { %v481_v45 = vshra.s32 %v479_v44, 16  ;;  %v480_v47 = vand.u32 65535, %v479_v44 }
 0x714   :  { %v483_v46 = vcvt.s32.f32 %v481_v45  ;;  %v482_v49 = vcvt.s32.f32 %v480_v47 }
 0x716   :  { %484 = vmin.xlane.f32.xlu1 %v483_v46 }
 0x789   :  { %v485_v48 = vpop.xlane.xlu1 %484 }
 0x78a   :  { %vm486_vm11 = vcmp.eq.f32.partialorder %v483_v46, %v485_v48  ;;  %v491_v51 = vcvt.f32.s32 %v485_v48 }
 0x78b   :  { %v487_v50 = vsel %vm486_vm11, %v482_v49, inf }
 0x78c   :  { %488 = vmin.xlane.f32.xlu2 %v487_v50  ;;  %v492_v55 = vshll.u32 %v491_v51, 16 }
 0x7ff   :  { %v489_v52 = vpop.xlane.xlu2 %488 }
 0x800   :  { %v490_v56 = vcvt.f32.s32 %v489_v52 }
 0x802   :  { %v493_v57 = vadd.s32 %v492_v55, %v490_v56 }
 0x804   :  { %vm494_vm13 = vcmp.eq.s32.totalorder %v1645_v36, %v493_v57  ;;  %v534_v58 = vsel %vm533_vm12, %v493_v57, %v400_v25 }
 0x805   :  { %v1736_v59 = vsel %vm494_vm13, 1.0, %v1446_v53  ;;  %vm935_vm13 = vcmp.eq.s32.totalorder %v1645_v36, 5 }
 0x806   :  { %1276 = vmatmul.msk.f32.vlgmr.msrb.gmra.mxu1 %vm55_vm0, %v1736_v59 }
 0x807   :  { %951 = vmatpush.msrb.mxu1 %v1537_v3 }
 0x809   :  { %952 = vmatpush.msrb.mxu1 %v1542_v4 }
 0x80b   :  { %953 = vmatpush.msrb.mxu1 %v1552_v5 }
 0x80d   :  { %954 = vmatpush.msrb.mxu1 %v1562_v7 }
 0x883   :  { %v577_v61 = vpop.f32.mrf.mxu1 }
 0x884   :  { %v578_v63 = vadd.f32 %v577_v61, %v554_v60 }
 0x886   :  { %v580_v0 = vadd.f32 %v578_v63, %v1615_v22 }
 0x888   :  { %1312 = vtanh.f32 %v580_v0 }
 0x88e   :  { %v1313_v1 = vpop.eup %1312 }
 0x88f   :  { %1277 = vmatmul.msk.f32.vlgmr.msrb.gmra.mxu2 %vm156_vm1, %v1313_v1  ;;  %1280 = vmatmul.msk.f32.vlgmr.msrb.gmra.mxu3 %vm156_vm1, %v1313_v1  ;;  %v1288_v1 = vld [vmem:[%s2087_s1 + $0x28] sm:$0xff] }
 0x890   :  { %976 = vmatpush.msrb.mxu2 %v1651_v43  ;;  %999 = vmatpush.msrb.mxu3 %v1580_v13 }
 0x892   :  { %977 = vmatpush.msrb.mxu2 %v1649_v42  ;;  %1000 = vmatpush.msrb.mxu3 %v1586_v14 }
 0x894   :  { %1001 = vmatpush.msrb.mxu3 %v1592_v15 }
 0x896   :  { %1002 = vmatpush.msrb.mxu3 %v1599_v16 }
 0x912   :  { %v602_v2 = vpop.f32.mrf.mxu2  ;;  %v688_v35 = vpop.f32.mrf.mxu3 }
 0x913   :  { %v1757_v8 = vadd.f32 %v1623_v27, %v602_v2 }
 0x915   :  { %v607_v9 = vadd.f32 %v1278_v6, %v1757_v8 }
 0x917   :  { %v608_v10 = vsel %vm55_vm0, %v607_v9, -inf }
 0x918   :  { %609 = vmax.xlane.f32.xlu0 %v608_v10 }
 0x98b   :  { %v610_v11 = vpop.xlane.xlu0 %609 }
 0x98c   :  { %vm611_vm14 = vcmp.ge.f32.partialorder %v607_v9, %v610_v11 }
 0x98d   :  { %v612_v12 = vsel %vm611_vm14, %v1645_v36, 16 }
 0x98e   :  { %v613_v17 = vsel %vm55_vm0, %v612_v12, 2147483647 }
 0x98f   :  { %v615_v18 = vshra.s32 %v613_v17, 16  ;;  %v614_v20 = vand.u32 65535, %v613_v17 }
 0x991   :  { %v617_v19 = vcvt.s32.f32 %v615_v18  ;;  %v616_v23 = vcvt.s32.f32 %v614_v20 }
 0x993   :  { %618 = vmin.xlane.f32.xlu1 %v617_v19 }
 0xa06   :  { %v619_v21 = vpop.xlane.xlu1 %618 }
 0xa07   :  { %vm620_vm15 = vcmp.eq.f32.partialorder %v617_v19, %v619_v21  ;;  %v625_v25 = vcvt.f32.s32 %v619_v21 }
 0xa08   :  { %v621_v24 = vsel %vm620_vm15, %v616_v23, inf }
 0xa09   :  { %622 = vmin.xlane.f32.xlu2 %v621_v24  ;;  %v626_v29 = vshll.u32 %v625_v25, 16 }
 0xa7c   :  { %v623_v28 = vpop.xlane.xlu2 %622 }
 0xa7d   :  { %v624_v31 = vcvt.f32.s32 %v623_v28 }
 0xa7f   :  { %v627_v32 = vadd.s32 %v626_v29, %v624_v31 }
 0xa81   :  { %vm628_vm3 = vcmp.eq.s32.totalorder %v1645_v36, %v627_v32  ;;  %v668_v33 = vsel %vm667_vm2, %v627_v32, %v534_v58 }
 0xa82   :  { %v1768_v34 = vsel %vm628_vm3, 1.0, %v1446_v53 }
 0xa83   :  { %1281 = vmatmul.msk.f32.vlgmr.msrb.gmra.mxu0 %vm55_vm0, %v1768_v34 }
 0xa84   :  { %1085 = vmatpush.msrb.mxu0 %v1537_v3 }
 0xa86   :  { %1086 = vmatpush.msrb.mxu0 %v1542_v4  ;;  %v1283_v4 = vld [vmem:[%s2087_s1 + $0x20] sm:$0xff] }
 0xa88   :  { %1087 = vmatpush.msrb.mxu0 %v1552_v5 }
 0xa8a   :  { %1088 = vmatpush.msrb.mxu0 %v1562_v7 }
 0xb00   :  { %v711_v38 = vpop.f32.mrf.mxu0 }
 0xb01   :  { %v712_v39 = vadd.f32 %v711_v38, %v688_v35 }
 0xb03   :  { %v714_v40 = vadd.f32 %v712_v39, %v1615_v22 }
 0xb05   :  { %1314 = vtanh.f32 %v714_v40 }
 0xb0b   :  { %v1315_v41 = vpop.eup %1314 }
 0xb0c   :  { %1282 = vmatmul.msk.f32.vlgmr.msra.gmra.mxu1 %vm156_vm1, %v1315_v41  ;;  %1285 = vmatmul.msk.f32.vlgmr.msra.gmra.mxu2 %vm156_vm1, %v1315_v41 }
 0xb0d   :  { %1110 = vmatpush.msra.mxu1 %v1651_v43  ;;  %1133 = vmatpush.msra.mxu2 %v1580_v13 }
 0xb0f   :  { %1111 = vmatpush.msra.mxu1 %v1649_v42  ;;  %1134 = vmatpush.msra.mxu2 %v1586_v14 }
 0xb11   :  { %1135 = vmatpush.msra.mxu2 %v1592_v15 }
 0xb13   :  { %1136 = vmatpush.msra.mxu2 %v1599_v16 }
 0xb89   :  { %v736_v3 = vpop.f32.mrf.mxu1 }
 0xb8a   :  { %v1789_v5 = vadd.f32 %v1623_v27, %v736_v3 }
 0xb8c   :  { %v741_v7 = vadd.f32 %v1283_v4, %v1789_v5  ;;  %v1293_v4 = vld [vmem:[%s2087_s1 + $0x30] sm:$0xff] }
 0xb8e   :  { %v742_v13 = vsel %vm55_vm0, %v741_v7, -inf }
 0xb8f   :  { %743 = vmax.xlane.f32.xlu0 %v742_v13  ;;  %v822_v57 = vpop.f32.mrf.mxu2 }
 0xc02   :  { %v744_v42 = vpop.xlane.xlu0 %743 }
 0xc03   :  { %vm745_vm4 = vcmp.ge.f32.partialorder %v741_v7, %v744_v42 }
 0xc04   :  { %v746_v14 = vsel %vm745_vm4, %v1645_v36, 16  ;;  %vm1069_vm4 = vcmp.eq.s32.totalorder %v1645_v36, 6 }
 0xc05   :  { %v747_v15 = vsel %vm55_vm0, %v746_v14, 2147483647 }
 0xc06   :  { %v749_v16 = vshra.s32 %v747_v15, 16  ;;  %v748_v44 = vand.u32 65535, %v747_v15 }
 0xc08   :  { %v751_v43 = vcvt.s32.f32 %v749_v16  ;;  %v750_v46 = vcvt.s32.f32 %v748_v44 }
 0xc0a   :  { %752 = vmin.xlane.f32.xlu1 %v751_v43 }
 0xc7d   :  { %v753_v45 = vpop.xlane.xlu1 %752 }
 0xc7e   :  { %vm754_vm5 = vcmp.eq.f32.partialorder %v751_v43, %v753_v45  ;;  %v759_v48 = vcvt.f32.s32 %v753_v45  ;;  %v229_v45 = vsel %vm55_vm0, %v1629_v30, -inf }
 0xc7f   :  { %v755_v47 = vsel %vm754_vm5, %v750_v46, inf  ;;  %v631_v46 = vsel %vm55_vm0, %v1757_v8, -inf }
 0xc80   :  { %756 = vmin.xlane.f32.xlu2 %v755_v47  ;;  %v760_v50 = vshll.u32 %v759_v48, 16 }
 0xcf3   :  { %v757_v49 = vpop.xlane.xlu2 %756 }
 0xcf4   :  { %v758_v51 = vcvt.f32.s32 %v757_v49 }
 0xcf6   :  { %v761_v52 = vadd.s32 %v760_v50, %v758_v51 }
 0xcf8   :  { %vm762_vm9 = vcmp.eq.s32.totalorder %v1645_v36, %v761_v52  ;;  %v802_v55 = vsel %vm801_vm6, %v761_v52, %v668_v33 }
 0xcf9   :  { %v1800_v56 = vsel %vm762_vm9, 1.0, %v1446_v53 }
 0xcfa   :  { %1286 = vmatmul.msk.f32.vlgmr.msra.gmra.mxu3 %vm55_vm0, %v1800_v56 }
 0xd7d   :  { %v845_v58 = vpop.f32.mrf.mxu3 }
 0xd7e   :  { %v846_v60 = vadd.f32 %v845_v58, %v822_v57  ;;  %v363_v57 = vsel %vm55_vm0, %v1690_v62, -inf }
 0xd80   :  { %v848_v61 = vadd.f32 %v846_v60, %v1615_v22 }
 0xd82   :  { %1316 = vtanh.f32 %v848_v61 }
 0xd88   :  { %v1317_v63 = vpop.eup %1316 }
 0xd89   :  { %1287 = vmatmul.msk.f32.vlgmr.msra.gmra.mxu0 %vm156_vm1, %v1317_v63  ;;  %1290 = vmatmul.msk.f32.vlgmr.msrb.gmra.mxu1 %vm156_vm1, %v1317_v63  ;;  %v765_v63 = vsel %vm55_vm0, %v1789_v5, -inf }
 0xe06   :  { %v870_v0 = vpop.f32.mrf.mxu0  ;;  %v956_v35 = vpop.f32.mrf.mxu1 }
 0xe07   :  { %v1811_v2 = vadd.f32 %v1623_v27, %v870_v0 }
 0xe09   :  { %v875_v6 = vadd.f32 %v1288_v1, %v1811_v2 }
 0xe0b   :  { %v876_v9 = vsel %vm55_vm0, %v875_v6, -inf }
 0xe0c   :  { %877 = vmax.xlane.f32.xlu0 %v876_v9 }
 0xe7f   :  { %v878_v10 = vpop.xlane.xlu0 %877 }
 0xe80   :  { %vm879_vm10 = vcmp.ge.f32.partialorder %v875_v6, %v878_v10 }
 0xe81   :  { %v880_v11 = vsel %vm879_vm10, %v1645_v36, 16 }
 0xe82   :  { %v881_v12 = vsel %vm55_vm0, %v880_v11, 2147483647 }
 0xe83   :  { %v883_v17 = vshra.s32 %v881_v12, 16  ;;  %v882_v19 = vand.u32 65535, %v881_v12 }
 0xe85   :  { %v885_v18 = vcvt.s32.f32 %v883_v17  ;;  %v884_v21 = vcvt.s32.f32 %v882_v19 }
 0xe87   :  { %886 = vmin.xlane.f32.xlu1 %v885_v18 }
 0xefa   :  { %v887_v20 = vpop.xlane.xlu1 %886 }
 0xefb   :  { %vm888_vm11 = vcmp.eq.f32.partialorder %v885_v18, %v887_v20  ;;  %v893_v24 = vcvt.f32.s32 %v887_v20 }
 0xefc   :  { %v889_v23 = vsel %vm888_vm11, %v884_v21, inf }
 0xefd   :  { %890 = vmin.xlane.f32.xlu2 %v889_v23  ;;  %v894_v28 = vshll.u32 %v893_v24, 16 }
 0xf70   :  { %v891_v25 = vpop.xlane.xlu2 %890 }
 0xf71   :  { %v892_v29 = vcvt.f32.s32 %v891_v25 }
 0xf73   :  { %v895_v31 = vadd.s32 %v894_v28, %v892_v29 }
 0xf75   :  { %vm896_vm14 = vcmp.eq.s32.totalorder %v1645_v36, %v895_v31  ;;  %v1821_v32 = vsel %vm935_vm13, %v895_v31, %v802_v55 }
 0xf76   :  { %v1824_v33 = vsel %vm896_vm14, 1.0, %v1446_v53 }
 0xf77   :  { %1291 = vmatmul.msk.f32.vlgmr.msrb.gmra.mxu2 %vm55_vm0, %v1824_v33 }
 0xffa   :  { %v979_v38 = vpop.f32.mrf.mxu2 }
 0xffb   :  { %v980_v39 = vadd.f32 %v979_v38, %v956_v35 }
 0xffd   :  { %v982_v40 = vadd.f32 %v980_v39, %v1615_v22 }
 0xfff   :  { %1318 = vtanh.f32 %v982_v40 }
0x1005   :  { %v1319_v41 = vpop.eup %1318 }
0x1006   :  { %1292 = vmatmul.msk.f32.vlgmr.msrb.gmra.mxu3 %vm156_vm1, %v1319_v41  ;;  %1295 = vmatmul.msk.f32.vlgmr.msrb.gmra.mxu0 %vm156_vm1, %v1319_v41 }
0x1089   :  { %v1004_v3 = vpop.f32.mrf.mxu3 }
0x108a   :  { %v1005_v7 = vadd.f32 %v1623_v27, %v1004_v3 }
0x108c   :  { %v1009_v13 = vadd.f32 %v1293_v4, %v1005_v7  ;;  %v1033_v47 = vsel %vm55_vm0, %v1005_v7, -inf }
0x108e   :  { %v1010_v42 = vsel %vm55_vm0, %v1009_v13, -inf }
0x108f   :  { %1011 = vmax.xlane.f32.xlu0 %v1010_v42 }
0x1102   :  { %v1012_v14 = vpop.xlane.xlu0 %1011 }
0x1103   :  { %vm1013_vm15 = vcmp.ge.f32.partialorder %v1009_v13, %v1012_v14 }
0x1104   :  { %v1014_v15 = vsel %vm1013_vm15, %v1645_v36, 16 }
0x1105   :  { %v1015_v16 = vsel %vm55_vm0, %v1014_v15, 2147483647 }
0x1106   :  { %v1017_v43 = vshra.s32 %v1015_v16, 16  ;;  %v1016_v48 = vand.u32 65535, %v1015_v16 }
0x1108   :  { %v1019_v44 = vcvt.s32.f32 %v1017_v43  ;;  %v1018_v50 = vcvt.s32.f32 %v1016_v48 }
0x110a   :  { %1020 = vmin.xlane.f32.xlu1 %v1019_v44 }
0x1112   :  { %230 = vmax.xlane.f32.xlu1 %v229_v45 }
0x111a   :  { %632 = vmax.xlane.f32.xlu1 %v631_v46 }
0x1122   :  { %1034 = vmax.xlane.f32.xlu1 %v1033_v47 }
0x117d   :  { %v1021_v49 = vpop.xlane.xlu1 %1020 }
0x117e   :  { %vm1022_vm3 = vcmp.eq.f32.partialorder %v1019_v44, %v1021_v49  ;;  %v1027_v18 = vcvt.f32.s32 %v1021_v49  ;;  %v1090_v49 = vpop.f32.mrf.mxu0 }
0x117f   :  { %v1023_v51 = vsel %vm1022_vm3, %v1018_v50, inf }
0x1180   :  { %1024 = vmin.xlane.f32.xlu2 %v1023_v51  ;;  %v1028_v20 = vshll.u32 %v1027_v18, 16 }
0x1185   :  { %v231_v52 = vpop.xlane.xlu1 %230 }
0x1186   :  { %v232_v55 = vsub.f32 %v1629_v30, %v231_v52 }
0x1188   :  { %v233_v58 = vmul.f32 1.442695, %v232_v55  ;;  %364 = vmax.xlane.f32.xlu2 %v363_v57 }
0x118a   :  { %1320 = vpow2.f32 %v233_v58 }
0x118d   :  { %v633_v60 = vpop.xlane.xlu1 %632 }
0x118e   :  { %v1847_v61 = vsub.f32 %v1757_v8, %v633_v60 }
0x1190   :  { %v1321_v0 = vpop.eup %1320  ;;  %v635_v1 = vmul.f32 1.442695, %v1847_v61  ;;  %766 = vmax.xlane.f32.xlu2 %v765_v63 }
0x1191   :  { %v235_v6 = vsel %vm55_vm0, %v1321_v0, 0.0 }
0x1192   :  { %1322 = vpow2.f32 %v635_v1  ;;  %236 = vadd.xlane.f32.xlu1 %v235_v6  ;;  %v1298_v1 = vld [vmem:[%s2087_s1 + $0x38] sm:$0xff]  ;;  %s1447_s1 = smov [#allocation2]  }
0x1193   :  { %s1216_s20 = sshll.u32 %s1447_s1, 4  ;;  %s1217_s20 = int_to_ptr.vmem [resolvable:$true] %s1216_s20 }
0x1195   :  { %v1035_v30 = vpop.xlane.xlu1 %1034 }
0x1196   :  { %v1036_v9 = vsub.f32 %v1005_v7, %v1035_v30 }
0x1198   :  { %v1853_v10 = vpop.eup %1322  ;;  %v1037_v11 = vmul.f32 1.442695, %v1036_v9 }
0x1199   :  { %v637_v8 = vsel %vm55_vm0, %v1853_v10, 0.0 }
0x119a   :  { %1324 = vpow2.f32 %v1037_v11  ;;  %638 = vadd.xlane.f32.xlu1 %v637_v8 }
0x11a0   :  { %v1857_v12 = vpop.eup %1324 }
0x11a1   :  { %v1039_v17 = vsel %vm55_vm0, %v1857_v12, 0.0 }
0x11a2   :  { %1040 = vadd.xlane.f32.xlu1 %v1039_v17 }
0x11f3   :  { %v1025_v19 = vpop.xlane.xlu2 %1024 }
0x11f4   :  { %v1026_v21 = vcvt.f32.s32 %v1025_v19  ;;  %v899_v19 = vsel %vm55_vm0, %v1811_v2, -inf }
0x11f6   :  { %v1029_v23 = vadd.s32 %v1028_v20, %v1026_v21 }
0x11f8   :  { %vm1030_vm5 = vcmp.eq.s32.totalorder %v1645_v36, %v1029_v23  ;;  %v1866_v24 = vsel %vm1069_vm4, %v1029_v23, %v1821_v32 }
0x11f9   :  { %v1294_v25 = vsel %vm1030_vm5, 1.0, %v1446_v53 }
0x11fa   :  { %1296 = vmatmul.msk.f32.vlgmr.msra.gmra.mxu1 %vm55_vm0, %v1294_v25 }
0x11fb   :  { %v365_v57 = vpop.xlane.xlu2 %364 }
0x11fc   :  { %v1887_v58 = vsub.f32 %v1690_v62, %v365_v57 }
0x11fe   :  { %v367_v60 = vmul.f32 1.442695, %v1887_v58 }
0x1203   :  { %v767_v63 = vpop.xlane.xlu2 %766 }
0x1205   :  { %v237_v28 = vpop.xlane.xlu1 %236 }
0x1206   :  { %1326 = vrcp.f32 %v237_v28  ;;  %v252_v40 = vand.u32 2147483648, %v237_v28  ;;  %v250_v3 = vand.u32 2147483647, %v237_v28  ;;  %vm246_vm10 = vweird.f32 %v237_v28 }
0x1207   :  { %1328 = vlog2.f32 %v237_v28 }
0x1208   :  { %v253_v7 = vor.u32 1.1754944e-38, %v252_v40  ;;  %vm251_vm14 = vcmp.eq.f32.partialorder %v250_v3, 8.507059e+37 }
0x120c   :  { %v1327_v29 = vpop.eup %1326 }
0x120d   :  { %v242_v31 = vmul.f32 %v1327_v29, %v237_v28  ;;  %v1870_v35 = vpop.xlane.xlu1 %638  ;;  %v1329_v39 = vpop.eup %1328  ;;  %vm247_vm9 = vweird.f32 %v1327_v29 }
0x120e   :  { %v239_v4 = vmul.f32 0.6931472, %v1329_v39  ;;  %vm248_vm11 = vmor %vm246_vm10, %vm247_vm9  ;;  %vm648_vm3 = vweird.f32 %v1870_v35 }
0x120f   :  { %v243_v38 = vsub.f32 1.0, %v242_v31 }
0x1210   :  { %v1874_v15 = vsub.f32 %v232_v55, %v239_v4 }
0x1211   :  { %v244_v41 = vmul.f32 %v1327_v29, %v243_v38 }
0x1213   :  { %v245_v32 = vadd.f32 %v1327_v29, %v244_v41 }
0x1215   :  { %v1872_v13 = vpop.xlane.xlu1 %1040  ;;  %v249_v42 = vsel %vm248_vm11, %v1327_v29, %v245_v32 }
0x1216   :  { %v254_v14 = vsel %vm251_vm14, %v253_v7, %v249_v42  ;;  %1330 = vlog2.f32 %v1872_v13 }
0x1217   :  { %v255_v16 = vmul.f32 %v1321_v0, %v254_v14 }
0x1219   :  { %v256_v43 = vmul.f32 %v255_v16, %v1874_v15 }
0x121b   :  { %v257_v44 = vsel %vm55_vm0, %v256_v43, 0.0 }
0x121c   :  { %258 = vadd.xlane.f32.xlu1 %v257_v44  ;;  %v1331_v45 = vpop.eup %1330 }
0x121d   :  { %v1043_v46 = vmul.f32 0.6931472, %v1331_v45  ;;  %v652_v45 = vand.u32 2147483647, %v1870_v35 }
0x121f   :  { %v1879_v47 = vsub.f32 %v1036_v9, %v1043_v46  ;;  %v654_v46 = vand.u32 2147483648, %v1870_v35  ;;  %vm653_vm9 = vcmp.eq.f32.partialorder %v652_v45, 8.507059e+37 }
0x1221   :  { %v1882_v48 = vmul.f32 %v1294_v25, %v1879_v47 }
0x1277   :  { %v1113_v50 = vpop.f32.mrf.mxu1 }
0x1278   :  { %v1114_v51 = vadd.f32 %v1113_v50, %v1090_v49 }
0x127a   :  { %v1116_v52 = vadd.f32 %v1114_v51, %v1615_v22  ;;  %v1895_v22 = vsub.f32 %v1789_v5, %v767_v63 }
0x127c   :  { %1332 = vtanh.f32 %v1116_v52  ;;  %v769_v11 = vmul.f32 1.442695, %v1895_v22 }
0x127d   :  { %1334 = vpow2.f32 %v367_v60 }
0x127e   :  { %1336 = vpow2.f32 %v769_v11 }
0x127f   :  { %1338 = vrcp.f32 %v1870_v35 }
0x1282   :  { %v1333_v55 = vpop.eup %1332 }
0x1283   :  { %1297 = vmatmul.msk.f32.vlgmr.msra.gmra.mxu2 %vm156_vm1, %v1333_v55  ;;  %v1900_v8 = vpop.eup %1334 }
0x1284   :  { %v369_v17 = vsel %vm55_vm0, %v1900_v8, 0.0  ;;  %v1906_v5 = vpop.eup %1336 }
0x1285   :  { %v771_v18 = vsel %vm55_vm0, %v1906_v5, 0.0  ;;  %v1339_v20 = vpop.eup %1338 }
0x1286   :  { %v644_v23 = vmul.f32 %v1339_v20, %v1870_v35  ;;  %vm649_vm15 = vweird.f32 %v1339_v20 }
0x1287   :  { %vm650_vm5 = vmor %vm648_vm3, %vm649_vm15  ;;  %vm1050_vm3 = vweird.f32 %v1872_v13 }
0x1288   :  { %v645_v38 = vsub.f32 1.0, %v644_v23 }
0x128a   :  { %v646_v4 = vmul.f32 %v1339_v20, %v645_v38 }
0x128c   :  { %v647_v43 = vadd.f32 %v1339_v20, %v646_v4 }
0x128e   :  { %v651_v60 = vsel %vm650_vm5, %v1339_v20, %v647_v43 }
0x1306   :  { %v1138_v0 = vpop.f32.mrf.mxu2 }
0x1307   :  { %v1139_v6 = vadd.f32 %v1623_v27, %v1138_v0  ;;  %v497_v27 = vsel %vm55_vm0, %v1725_v37, -inf }
0x1309   :  { %v1167_v30 = vsel %vm55_vm0, %v1139_v6, -inf  ;;  %v1143_v9 = vadd.f32 %v1298_v1, %v1139_v6 }
0x130a   :  { %1168 = vmax.xlane.f32.xlu2 %v1167_v30 }
0x130b   :  { %v1144_v62 = vsel %vm55_vm0, %v1143_v9, -inf }
0x130c   :  { %1145 = vmax.xlane.f32.xlu0 %v1144_v62 }
0x1312   :  { %370 = vadd.xlane.f32.xlu2 %v369_v17 }
0x1314   :  { %498 = vmax.xlane.f32.xlu0 %v497_v27 }
0x131a   :  { %772 = vadd.xlane.f32.xlu2 %v771_v18 }
0x131c   :  { %900 = vmax.xlane.f32.xlu0 %v899_v19 }
0x137d   :  { %v1169_v21 = vpop.xlane.xlu2 %1168 }
0x137e   :  { %v1914_v25 = vsub.f32 %v1139_v6, %v1169_v21  ;;  %v655_v6 = vor.u32 1.1754944e-38, %v654_v46  ;;  %v1054_v46 = vand.u32 2147483647, %v1872_v13 }
0x137f   :  { %v1146_v28 = vpop.xlane.xlu0 %1145 }
0x1380   :  { %v1171_v29 = vmul.f32 1.442695, %v1914_v25  ;;  %vm1147_vm1 = vcmp.ge.f32.partialorder %v1143_v9, %v1146_v28  ;;  %v656_v9 = vsel %vm653_vm9, %v655_v6, %v651_v60  ;;  %vm1055_vm9 = vcmp.eq.f32.partialorder %v1054_v46, 8.507059e+37 }
0x1381   :  { %v1148_v31 = vsel %vm1147_vm1, %v1645_v36, 16  ;;  %v657_v23 = vmul.f32 %v1853_v10, %v656_v9 }
0x1382   :  { %1340 = vpow2.f32 %v1171_v29  ;;  %v1919_v39 = vsel %vm55_vm0, %v1148_v31, 2147483647 }
0x1383   :  { %v1151_v40 = vshra.s32 %v1919_v39, 16  ;;  %1342 = vrcp.f32 %v1872_v13 }
0x1385   :  { %v371_v41 = vpop.xlane.xlu2 %370  ;;  %v1923_v3 = vcvt.s32.f32 %v1151_v40 }
0x1386   :  { %1344 = vrcp.f32 %v371_v41  ;;  %v386_v30 = vand.u32 2147483648, %v371_v41  ;;  %v384_v11 = vand.u32 2147483647, %v371_v41  ;;  %vm380_vm11 = vweird.f32 %v371_v41 }
0x1387   :  { %1154 = vmin.xlane.f32.xlu0 %v1923_v3  ;;  %v499_v32 = vpop.xlane.xlu0 %498  ;;  %1346 = vlog2.f32 %v371_v41 }
0x1388   :  { %v1926_v7 = vpop.eup %1340  ;;  %v1929_v42 = vsub.f32 %v1725_v37, %v499_v32  ;;  %1348 = vlog2.f32 %v1870_v35  ;;  %v261_v37 = vmul.f32 %v1669_v54, %v1874_v15  ;;  %v387_v28 = vor.u32 1.1754944e-38, %v386_v30 }
0x1389   :  { %v1173_v14 = vsel %vm55_vm0, %v1926_v7, 0.0  ;;  %v1935_v44 = vpop.eup %1342  ;;  %vm385_vm1 = vcmp.eq.f32.partialorder %v384_v11, 8.507059e+37 }
0x138a   :  { %v501_v16 = vmul.f32 1.442695, %v1929_v42  ;;  %1174 = vadd.xlane.f32.xlu2 %v1173_v14  ;;  %v1046_v55 = vmul.f32 %v1935_v44, %v1872_v13  ;;  %v262_v35 = vsel %vm55_vm0, %v261_v37, 0.0  ;;  %vm1051_vm15 = vweird.f32 %v1935_v44 }
0x138b   :  { %vm1052_vm5 = vmor %vm1050_vm3, %vm1051_vm15 }
0x138c   :  { %v1345_v49 = vpop.eup %1344  ;;  %1350 = vpow2.f32 %v501_v16  ;;  %v1047_v27 = vsub.f32 1.0, %v1046_v55 }
0x138d   :  { %v1347_v50 = vpop.eup %1346  ;;  %v376_v51 = vmul.f32 %v1345_v49, %v371_v41  ;;  %v1942_v52 = vpop.xlane.xlu2 %772  ;;  %vm381_vm10 = vweird.f32 %v1345_v49 }
0x138e   :  { %v373_v57 = vmul.f32 0.6931472, %v1347_v50  ;;  %v1349_v63 = vpop.eup %1348  ;;  %1352 = vlog2.f32 %v1942_v52  ;;  %vm382_vm14 = vmor %vm380_vm11, %vm381_vm10  ;;  %v1048_v38 = vmul.f32 %v1935_v44, %v1047_v27  ;;  %v788_v30 = vand.u32 2147483648, %v1942_v52 }
0x138f   :  { %v377_v0 = vsub.f32 1.0, %v376_v51  ;;  %v901_v1 = vpop.xlane.xlu0 %900  ;;  %v641_v20 = vmul.f32 0.6931472, %v1349_v63 }
0x1390   :  { %v1948_v54 = vsub.f32 %v1811_v2, %v901_v1  ;;  %v374_v15 = vsub.f32 %v1887_v58, %v373_v57  ;;  %v1049_v16 = vadd.f32 %v1935_v44, %v1048_v38 }
0x1391   :  { %v378_v62 = vmul.f32 %v1345_v49, %v377_v0 }
0x1392   :  { %v1952_v17 = vpop.eup %1350  ;;  %v903_v18 = vmul.f32 1.442695, %v1948_v54  ;;  %263 = vadd.xlane.f32.xlu2 %v262_v35  ;;  %v395_v19 = vmul.f32 %v1704_v26, %v374_v15  ;;  %v1962_v26 = vsub.f32 %v1847_v61, %v641_v20  ;;  %v1056_v61 = vand.u32 2147483648, %v1872_v13 }
0x1393   :  { %v503_v2 = vsel %vm55_vm0, %v1952_v17, 0.0  ;;  %v379_v21 = vadd.f32 %v1345_v49, %v378_v62  ;;  %v1150_v13 = vand.u32 65535, %v1919_v39  ;;  %v786_v62 = vand.u32 2147483647, %v1942_v52 }
0x1394   :  { %1354 = vpow2.f32 %v903_v18  ;;  %504 = vadd.xlane.f32.xlu0 %v503_v2  ;;  %v396_v58 = vsel %vm55_vm0, %v395_v19, 0.0  ;;  %v1353_v29 = vpop.eup %1352  ;;  %v658_v4 = vmul.f32 %v657_v23, %v1962_v26  ;;  %v1057_v37 = vor.u32 1.1754944e-38, %v1056_v61 }
0x1395   :  { %397 = vadd.xlane.f32.xlu1 %v396_v58  ;;  %v383_v31 = vsel %vm382_vm14, %v1345_v49, %v379_v21  ;;  %v775_v32 = vmul.f32 0.6931472, %v1353_v29  ;;  %v1053_v49 = vsel %vm1052_vm5, %v1935_v44, %v1049_v16  ;;  %1356 = vrcp.f32 %v1942_v52 }
0x1396   :  { %v388_v40 = vsel %vm385_vm1, %v387_v28, %v383_v31  ;;  %v659_v45 = vsel %vm55_vm0, %v658_v4, 0.0  ;;  %v1058_v51 = vsel %vm1055_vm9, %v1057_v37, %v1053_v49  ;;  %v1152_v63 = vcvt.s32.f32 %v1150_v13 }
0x1397   :  { %v389_v41 = vmul.f32 %v1900_v8, %v388_v40  ;;  %v1976_v8 = vsub.f32 %v1895_v22, %v775_v32  ;;  %v1059_v57 = vmul.f32 %v1857_v12, %v1058_v51  ;;  %vm782_vm14 = vweird.f32 %v1942_v52 }
0x1398   :  { %v789_v58 = vor.u32 1.1754944e-38, %v788_v30  ;;  %vm787_vm15 = vcmp.eq.f32.partialorder %v786_v62, 8.507059e+37 }
0x1399   :  { %v390_v14 = vmul.f32 %v389_v41, %v374_v15  ;;  %v797_v50 = vmul.f32 %v1800_v56, %v1976_v8  ;;  %v1060_v22 = vmul.f32 %v1059_v57, %v1879_v47 }
0x139a   :  { %v1967_v10 = vpop.eup %1354 }
0x139b   :  { %v905_v43 = vsel %vm55_vm0, %v1967_v10, 0.0  ;;  %v798_v55 = vsel %vm55_vm0, %v797_v50, 0.0  ;;  %v1061_v60 = vsel %vm55_vm0, %v1060_v22, 0.0  ;;  %v1357_v0 = vpop.eup %1356  ;;  %v391_v6 = vsel %vm55_vm0, %v390_v14, 0.0 }
0x139c   :  { %906 = vadd.xlane.f32.xlu0 %v905_v43  ;;  %v778_v12 = vmul.f32 %v1357_v0, %v1942_v52  ;;  %vm783_vm11 = vweird.f32 %v1357_v0 }
0x139d   :  { %660 = vadd.xlane.f32.xlu1 %v659_v45  ;;  %vm784_vm1 = vmor %vm782_vm14, %vm783_vm11 }
0x139e   :  { %v779_v1 = vsub.f32 1.0, %v778_v12 }
0x13a0   :  { %v780_v35 = vmul.f32 %v1357_v0, %v779_v1 }
0x13a2   :  { %v781_v15 = vadd.f32 %v1357_v0, %v780_v35 }
0x13a4   :  { %v785_v2 = vsel %vm784_vm1, %v1357_v0, %v781_v15 }
0x13a5   :  { %799 = vadd.xlane.f32.xlu1 %v798_v55  ;;  %v790_v31 = vsel %vm787_vm15, %v789_v58, %v785_v2 }
0x13a6   :  { %v791_v16 = vmul.f32 %v1906_v5, %v790_v31 }
0x13a8   :  { %v792_v37 = vmul.f32 %v791_v16, %v1976_v8 }
0x13aa   :  { %v793_v8 = vsel %vm55_vm0, %v792_v37, 0.0 }
0x13ad   :  { %1062 = vadd.xlane.f32.xlu1 %v1061_v60 }
0x13fa   :  { %v1989_v44 = vpop.xlane.xlu0 %1154 }
0x13fb   :  { %vm1156_vm10 = vcmp.eq.f32.partialorder %v1923_v3, %v1989_v44 }
0x13fc   :  { %v1157_v56 = vsel %vm1156_vm10, %v1152_v63, inf }
0x13fd   :  { %1158 = vmin.xlane.f32.xlu0 %v1157_v56  ;;  %v1994_v47 = vpop.xlane.xlu2 %1174 }
0x13fe   :  { %1358 = vrcp.f32 %v1994_v47  ;;  %v1190_v22 = vand.u32 2147483648, %v1994_v47  ;;  %v1188_v56 = vand.u32 2147483647, %v1994_v47 }
0x1400   :  { %v1191_v35 = vor.u32 1.1754944e-38, %v1190_v22 }
0x1404   :  { %v1998_v3 = vpop.eup %1358 }
0x1405   :  { %392 = vadd.xlane.f32.xlu0 %v391_v6  ;;  %v1180_v19 = vmul.f32 %v1998_v3, %v1994_v47  ;;  %vm1185_vm14 = vweird.f32 %v1998_v3 }
0x1407   :  { %v505_v39 = vpop.xlane.xlu0 %504  ;;  %v1181_v38 = vsub.f32 1.0, %v1180_v19  ;;  %v1066_v19 = vsel %vm55_vm0, %v1882_v48, 0.0 }
0x1408   :  { %1360 = vrcp.f32 %v505_v39  ;;  %v520_v28 = vand.u32 2147483648, %v505_v39  ;;  %v518_v52 = vand.u32 2147483647, %v505_v39  ;;  %vm514_vm5 = vweird.f32 %v505_v39 }
0x1409   :  { %1362 = vlog2.f32 %v505_v39  ;;  %v1182_v46 = vmul.f32 %v1998_v3, %v1181_v38 }
0x140a   :  { %v521_v14 = vor.u32 1.1754944e-38, %v520_v28  ;;  %vm519_vm10 = vcmp.eq.f32.partialorder %v518_v52, 8.507059e+37  ;;  %v264_v52 = vpop.xlane.xlu2 %263 }
0x140b   :  { %v1183_v57 = vadd.f32 %v1998_v3, %v1182_v46  ;;  %v267_v31 = vsel %vm265_vm7, %v264_v52, 0.0 }
0x140e   :  { %v1361_v9 = vpop.eup %1360 }
0x140f   :  { %v1363_v11 = vpop.eup %1362  ;;  %v510_v27 = vmul.f32 %v1361_v9, %v505_v39  ;;  %v907_v18 = vpop.xlane.xlu0 %906  ;;  %vm515_vm3 = vweird.f32 %v1361_v9  ;;  %v663_v39 = vmul.f32 %v1768_v34, %v1962_v26 }
0x1410   :  { %1364 = vrcp.f32 %v907_v18  ;;  %v507_v20 = vmul.f32 0.6931472, %v1363_v11  ;;  %vm516_vm9 = vmor %vm514_vm5, %vm515_vm3  ;;  %v922_v5 = vand.u32 2147483648, %v907_v18  ;;  %vm916_vm1 = vweird.f32 %v907_v18 }
0x1411   :  { %v511_v21 = vsub.f32 1.0, %v510_v27  ;;  %1366 = vlog2.f32 %v907_v18  ;;  %vm1184_vm3 = vweird.f32 %v1994_v47 }
0x1412   :  { %v508_v23 = vsub.f32 %v1929_v42, %v507_v20  ;;  %1368 = vlog2.f32 %v1994_v47  ;;  %vm1186_vm5 = vmor %vm1184_vm3, %vm1185_vm14  ;;  %v923_v12 = vor.u32 1.1754944e-38, %v922_v5  ;;  %v664_v47 = vsel %vm55_vm0, %v663_v39, 0.0 }
0x1413   :  { %v512_v29 = vmul.f32 %v1361_v9, %v511_v21  ;;  %v1187_v1 = vsel %vm1186_vm5, %v1998_v3, %v1183_v57  ;;  %vm1207_vm14 = vcmask 72704  }
0x1414   :  { %v529_v40 = vmul.f32 %v1736_v59, %v508_v23 }
0x1415   :  { %v513_v41 = vadd.f32 %v1361_v9, %v512_v29 }
0x1416   :  { %v1365_v4 = vpop.eup %1364  ;;  %v530_v32 = vsel %vm55_vm0, %v529_v40, 0.0 }
0x1417   :  { %v1367_v43 = vpop.eup %1366  ;;  %v912_v42 = vmul.f32 %v1365_v4, %v907_v18  ;;  %531 = vadd.xlane.f32.xlu0 %v530_v32  ;;  %v517_v61 = vsel %vm516_vm9, %v1361_v9, %v513_v41  ;;  %vm917_vm11 = vweird.f32 %v1365_v4 }
0x1418   :  { %v522_v45 = vsel %vm519_vm10, %v521_v14, %v517_v61  ;;  %v909_v50 = vmul.f32 0.6931472, %v1367_v43  ;;  %vm918_vm15 = vmor %vm916_vm1, %vm917_vm11  ;;  %v1369_v6 = vpop.eup %1368  ;;  %vm1189_vm10 = vcmp.eq.f32.partialorder %v1188_v56, 8.507059e+37  ;;  %vm1203_vm11 = vcmp.eq.s32.totalorder %v1645_v36, 7 }
0x1419   :  { %v913_v49 = vsub.f32 1.0, %v912_v42  ;;  %v523_v59 = vmul.f32 %v1952_v17, %v522_v45  ;;  %v920_v17 = vand.u32 2147483647, %v907_v18  ;;  %v1192_v30 = vsel %vm1189_vm10, %v1191_v35, %v1187_v1 }
0x141a   :  { %v910_v63 = vsub.f32 %v1948_v54, %v909_v50  ;;  %v1177_v9 = vmul.f32 0.6931472, %v1369_v6  ;;  %v1193_v3 = vmul.f32 %v1926_v7, %v1192_v30 }
0x141b   :  { %v524_v51 = vmul.f32 %v523_v59, %v508_v23  ;;  %v914_v55 = vmul.f32 %v1365_v4, %v913_v49  ;;  %vm921_vm9 = vcmp.eq.f32.partialorder %v920_v17, 8.507059e+37  ;;  %v259_v23 = vpop.xlane.xlu1 %258 }
0x141c   :  { %v931_v15 = vmul.f32 %v1824_v33, %v910_v63  ;;  %v1178_v34 = vsub.f32 %v1914_v25, %v1177_v9  ;;  %v260_v14 = vsub.f32 0.0, %v259_v23 }
0x141d   :  { %v525_v60 = vsel %vm55_vm0, %v524_v51, 0.0  ;;  %v915_v13 = vadd.f32 %v1365_v4, %v914_v55 }
0x141e   :  { %526 = vadd.xlane.f32.xlu2 %v525_v60  ;;  %v932_v11 = vsel %vm55_vm0, %v931_v15, 0.0  ;;  %v1194_v27 = vmul.f32 %v1193_v3, %v1178_v34  ;;  %v268_v46 = vsel %vm265_vm7, %v260_v14, 0.0 }
0x141f   :  { %794 = vadd.xlane.f32.xlu0 %v793_v8  ;;  %v919_v0 = vsel %vm918_vm15, %v1365_v4, %v915_v13 }
0x1420   :  { %v924_v54 = vsel %vm921_vm9, %v923_v12, %v919_v0  ;;  %v1195_v18 = vsel %vm55_vm0, %v1194_v27, 0.0 }
0x1421   :  { %v925_v62 = vmul.f32 %v1967_v10, %v924_v54  ;;  %v1161_v10 = vcvt.f32.s32 %v1989_v44 }
0x1423   :  { %v926_v26 = vmul.f32 %v925_v62, %v910_v63  ;;  %v1162_v2 = vshll.u32 %v1161_v10, 16  ;;  %v398_v28 = vpop.xlane.xlu1 %397 }
0x1424   :  { %v401_v38 = vsel %vm399_vm8, %v398_v28, %v267_v31 }
0x1425   :  { %v927_v33 = vsel %vm55_vm0, %v926_v26, 0.0 }
0x1426   :  { %665 = vadd.xlane.f32.xlu2 %v664_v47 }
0x1427   :  { %933 = vadd.xlane.f32.xlu0 %v932_v11 }
0x142b   :  { %v661_v40 = vpop.xlane.xlu1 %660 }
0x142c   :  { %v662_v51 = vsub.f32 0.0, %v661_v40 }
0x142e   :  { %928 = vadd.xlane.f32.xlu2 %v927_v33 }
0x142f   :  { %1196 = vadd.xlane.f32.xlu0 %v1195_v18 }
0x1433   :  { %v800_v32 = vpop.xlane.xlu1 %799 }
0x1436   :  { %1067 = vadd.xlane.f32.xlu2 %v1066_v19 }
0x143b   :  { %v1063_v55 = vpop.xlane.xlu1 %1062 }
0x143c   :  { %v1064_v17 = vsub.f32 0.0, %v1063_v55 }
0x1470   :  { %v1159_v20 = vpop.xlane.xlu0 %1158 }
0x1471   :  { %v1160_v7 = vcvt.f32.s32 %v1159_v20 }
0x1473   :  { %v1163_v25 = vadd.s32 %v1162_v2, %v1160_v7 }
0x1475   :  { %vm1164_vm1 = vcmp.eq.s32.totalorder %v1645_v36, %v1163_v25  ;;  %v1204_v48 = vsel %vm1203_vm11, %v1163_v25, %v1866_v24 }
0x1476   :  { %v1299_v44 = vsel %vm1164_vm1, 1.0, %v1446_v53  ;;  %1208 = vst.msk [vmem:[#allocation2] sm:$0xff] %vm1207_vm14, %v1204_v48 }
0x1477   :  { %v1199_v21 = vmul.f32 %v1299_v44, %v1178_v34  ;;  %1221 = dma.vmem_to_hbm [thread:$0]  %s1217_s20, 128, %s1219_s8, [#allocation3]  }
0x1478   :  { %v393_v29 = vpop.xlane.xlu0 %392 }
0x1479   :  { %v1200_v58 = vsel %vm55_vm0, %v1199_v21, 0.0  ;;  %v394_v16 = vsub.f32 0.0, %v393_v29 }
0x147a   :  { %1201 = vadd.xlane.f32.xlu1 %v1200_v58 }
0x147b   :  { %v402_v59 = vsel %vm399_vm8, %v394_v16, %v268_v46 }
0x148a   :  { %v532_v24 = vpop.xlane.xlu0 %531 }
0x148b   :  { %v535_v53 = vsel %vm533_vm12, %v532_v24, %v401_v38 }
0x1491   :  { %v527_v41 = vpop.xlane.xlu2 %526 }
0x1492   :  { %v795_v4 = vpop.xlane.xlu0 %794  ;;  %v528_v43 = vsub.f32 0.0, %v527_v41 }
0x1493   :  { %v796_v57 = vsub.f32 0.0, %v795_v4 }
0x1494   :  { %v536_v50 = vsel %vm533_vm12, %v528_v43, %v402_v59 }
0x1495   :  { %v670_v5 = vsel %vm667_vm2, %v662_v51, %v536_v50 }
0x1496   :  { %v804_v8 = vsel %vm801_vm6, %v796_v57, %v670_v5 }
0x1499   :  { %v666_v42 = vpop.xlane.xlu2 %665 }
0x149a   :  { %v934_v61 = vpop.xlane.xlu0 %933  ;;  %v669_v45 = vsel %vm667_vm2, %v666_v42, %v535_v53 }
0x149b   :  { %v803_v49 = vsel %vm801_vm6, %v800_v32, %v669_v45 }
0x149c   :  { %v937_v37 = vsel %vm935_vm13, %v934_v61, %v803_v49 }
0x14a1   :  { %v929_v22 = vpop.xlane.xlu2 %928 }
0x14a2   :  { %v1197_v60 = vpop.xlane.xlu0 %1196  ;;  %v930_v13 = vsub.f32 0.0, %v929_v22 }
0x14a3   :  { %v1198_v63 = vsub.f32 0.0, %v1197_v60 }
0x14a4   :  { %v938_v56 = vsel %vm935_vm13, %v930_v13, %v804_v8 }
0x14a5   :  { %v1072_v0 = vsel %vm1069_vm4, %v1064_v17, %v938_v56 }
0x14a6   :  { %v1206_v12 = vsel %vm1203_vm11, %v1198_v63, %v1072_v0 }
0x14a7   :  { %1210 = vst.msk [vmem:[#allocation6] sm:$0xff] %vm1207_vm14, %v1206_v12 }
0x14a9   :  { %v1068_v1 = vpop.xlane.xlu2 %1067 }
0x14aa   :  { %v1071_v6 = vsel %vm1069_vm4, %v1068_v1, %v937_v37 }
0x14ed   :  { %v1202_v39 = vpop.xlane.xlu1 %1201 }
0x14ee   :  { %v1205_v35 = vsel %vm1203_vm11, %v1202_v39, %v1071_v6 }
0x14ef   :  { %1209 = vst.msk [vmem:[#allocation4] sm:$0xff] %vm1207_vm14, %v1205_v35 }
0x14f0   :  { %1232 = dma.vmem_to_hbm [thread:$0]  %s1228_s0, 128, %s1230_s7, [#allocation5]  }
0x14f1   :  { %1243 = dma.vmem_to_hbm [thread:$0]  %s1239_s24, 128, %s1241_s26, [#allocation5]  }
0x14f2   :  { %1442 = dma.done.wait [#allocation3], 128  }
0x14f3   :  { %1443 = vsyncadd [#allocation3], 4294967168 }
0x14f4   :  { %1444 = dma.done.wait [#allocation5], 256  }
0x14f5   :  { %1445 = vsyncadd [#allocation5], 4294967040 }
0x14f6   :  { %1256 = vsyncpa [#allocation3], 1 }
0x14f7   :  { %1257 = vsyncpa [#allocation5], 1 }

</bundles_post_ra>
